<compile_context>
chip_gen: v5e
topology: v5e:2x2
jax: 0.10.0
libtpu: 0.0.40
codegen_flags: <defaults>
</compile_context>

<pallas_src>
import functools

import jax
import jax.numpy as jnp
from jax import lax
from jax.experimental import pallas as pl
from jax.experimental.pallas import tpu as pltpu


def _shifted_conv(src_ref, w_ref, base, offs, length, mm_dtype):
    """3x3 'SAME' conv via 9 lane-shifted-slice dot-accumulates (f32 acc).

    src_ref : (C_in, L_src)    channel-major, zero-padded flattened feature map
    w_ref   : (9, C_out, C_in) per-tap weights
    Returns : (C_out, length)  f32 conv result for the contiguous flat window
              starting at `base` (static slice offsets are `base + offs[k]`).
    """
    acc = None
    for k, d in enumerate(offs):
        xk = src_ref[:, pl.ds(base + d, length)].astype(mm_dtype)
        t = jnp.dot(w_ref[k], xk, preferred_element_type=jnp.float32)
        acc = t if acc is None else acc + t
    return acc


def _gated_fuser_kernel(xf_ref, wg_ref, bg_ref, wf_ref, scale_ref, shift_ref,
                        fe_ref, pre_ref, post_ref, feat_ref,
                        *, lp, lv, pe, offs):
    """One batch element: gate conv + sigmoid gating + fuse conv + BN + ReLU.

    xf_ref   : (Cin, Le)      zero-padded, flattened concat(input1, input2)
    wg_ref   : (9, Cg, Cin)   merged gate-conv weights (Cg = C1 + C2 = Cin)
    bg_ref   : (Cg, 1)        merged gate-conv bias
    wf_ref   : (9, Cout, Cg)  output-fuser conv weights (no bias)
    scale_ref/shift_ref : (Cout, 1) fused BatchNorm affine (inference mode)
    fe_ref   : (Cg, Lp)       gated features on the padded grid (module output)
    pre_ref  : (Cout, Lv)     conv + BN result (pre-ReLU), contiguous valid span
    post_ref : (Cout, Lv)     ReLU result, contiguous valid span
    feat_ref : (Cg, Lp)       f32 VMEM scratch: gated features incl. zero halo
    """
    mm_dtype = wg_ref.dtype

    # ---- stage 1: merged gate conv (+ bias) and sigmoid gating -------------
    # Computed over the full padded grid (Lp positions); halo positions get
    # harmless finite junk that is zeroed by x_center (== 0 there) below.
    zg = _shifted_conv(xf_ref, wg_ref, pe, offs, lp, mm_dtype) + bg_ref[...]
    x_center = xf_ref[:, pl.ds(pe, lp)].astype(jnp.float32)   # tap (0, 0)
    feat = x_center * jax.nn.sigmoid(zg)        # (Cg, Lp) f32, zero on the halo
    feat_ref[...] = feat
    fe_ref[...] = feat.astype(fe_ref.dtype)

    # ---- stage 2: fuse conv (no bias) + BatchNorm affine + ReLU ------------
    # The valid contiguous span starts at flat offset q0 == Wp + 1 == pe.
    zf = _shifted_conv(feat_ref, wf_ref, pe, offs, lv, mm_dtype)
    y = zf * scale_ref[...] + shift_ref[...]
    pre_ref[...] = y.astype(pre_ref.dtype)
    post_ref[...] = jnp.maximum(y, 0.0).astype(post_ref.dtype)


def gated_fuser_forward(x1_nchw, x2_nchw, params, *, matmul_dtype=jnp.float32):
    """GatedFuser forward. Inputs/outputs are PyTorch-style NCHW tensors.

    Returns (out_before_relu, out_after_relu, feat_enh_sensor_1,
             feat_enh_sensor_2), matching the PyTorch module.
    `matmul_dtype=jnp.bfloat16` casts only the MXU operands (v6e/v7x option);
    gating / BN / ReLU always run in f32 (v5e-safe).
    """
    n, c1, h, w = x1_nchw.shape
    c2 = x2_nchw.shape[1]
    cin = c1 + c2                       # also the merged gate output channels
    cout = params["w3"].shape[-1]

    hp, wp = h + 2, w + 2               # spatially padded grid
    lp = hp * wp                        # flattened padded-grid length
    lv = (h - 1) * wp + w               # contiguous span covering valid pixels
    pe = wp + 1                         # extra flat pad so every 3x3 shift of
    le = lp + 2 * pe                    # the full Lp grid stays in bounds

    # ---- build the single flattened, zero-padded, channel-major input ------
    # (NCHW stays channel-major end to end: no transposes anywhere.)
    cat = jnp.concatenate([x1_nchw, x2_nchw], axis=1)                 # (N,Cin,H,W)
    xp = jnp.pad(cat, ((0, 0), (0, 0), (1, 1), (1, 1)))               # (N,Cin,Hp,Wp)
    xf = jnp.pad(xp.reshape(n, cin, lp), ((0, 0), (0, 0), (pe, pe)))  # (N,Cin,Le)

    # ---- fold parameters ----------------------------------------------------
    # Merged gate conv: one (Cin -> C1+C2) weight per 3x3 tap, stored (Co, Ci).
    wg = jnp.concatenate([params["w1"].reshape(9, cin, c1),
                          params["w2"].reshape(9, cin, c2)], axis=-1)  # (9,Cin,Cg)
    wg = jnp.transpose(wg, (0, 2, 1))                                  # (9,Cg,Cin)
    bg = jnp.concatenate([params["b1"], params["b2"]]).reshape(cin, 1)
    wf = jnp.transpose(params["w3"].reshape(9, cin, cout), (0, 2, 1))  # (9,Cout,Cg)
    inv_std = 1.0 / jnp.sqrt(params["bn_var"] + params["bn_eps"])
    scale = (params["bn_gamma"] * inv_std).reshape(cout, 1)
    shift = (params["bn_beta"]
             - params["bn_mean"] * params["bn_gamma"] * inv_std).reshape(cout, 1)

    wg = wg.astype(matmul_dtype)
    wf = wf.astype(matmul_dtype)

    offs = tuple(dy * wp + dx for dy in (-1, 0, 1) for dx in (-1, 0, 1))
    kernel = functools.partial(_gated_fuser_kernel, lp=lp, lv=lv, pe=pe, offs=offs)

    def resident(shape):                # weights stay VMEM-resident over the grid
        return pl.BlockSpec(shape, lambda i, _n=len(shape): (0,) * _n)

    out_dtype = x1_nchw.dtype
    fe, pre, post = pl.pallas_call(
        kernel,
        out_shape=(jax.ShapeDtypeStruct((n, cin, lp), out_dtype),
                   jax.ShapeDtypeStruct((n, cout, lv), out_dtype),
                   jax.ShapeDtypeStruct((n, cout, lv), out_dtype)),
        grid=(n,),
        in_specs=[pl.BlockSpec((None, cin, le), lambda i: (i, 0, 0)),
                  resident((9, cin, cin)),
                  resident((cin, 1)),
                  resident((9, cout, cin)),
                  resident((cout, 1)),
                  resident((cout, 1))],
        out_specs=(pl.BlockSpec((None, cin, lp), lambda i: (i, 0, 0)),
                   pl.BlockSpec((None, cout, lv), lambda i: (i, 0, 0)),
                   pl.BlockSpec((None, cout, lv), lambda i: (i, 0, 0))),
        scratch_shapes=[pltpu.VMEM((cin, lp), jnp.float32)],
        compiler_params=pltpu.CompilerParams(
            dimension_semantics=("parallel",)),
    )(xf, wg, bg, wf, scale, shift)

    # ---- unflatten / crop the halo (cheap XLA glue, no transposes) ----------
    feat = fe.reshape(n, cin, hp, wp)[:, :, 1:h + 1, 1:w + 1]      # (N, Cin, H, W)
    feat1, feat2 = feat[:, :c1], feat[:, c1:]

    def crop(t):                        # (N, Cout, Lv) -> (N, Cout, H, W)
        t = jnp.pad(t, ((0, 0), (0, 0), (0, h * wp - lv)))
        return t.reshape(n, cout, h, wp)[:, :, :, :w]

    return crop(pre), crop(post), feat1, feat2


def reference_forward(x1_nchw, x2_nchw, params):
    """Pure-JAX reference (matches PyTorch eval-mode forward), NCHW outputs."""
    x1 = jnp.transpose(x1_nchw, (0, 2, 3, 1))
    x2 = jnp.transpose(x2_nchw, (0, 2, 3, 1))
    dn = ("NHWC", "HWIO", "NHWC")

    def conv(x, wgt):
        return lax.conv_general_dilated(x, wgt, (1, 1), "SAME",
                                        dimension_numbers=dn,
                                        precision=lax.Precision.HIGHEST)

    cat = jnp.concatenate([x1, x2], axis=-1)
    g1 = jax.nn.sigmoid(conv(cat, params["w1"]) + params["b1"])
    g2 = jax.nn.sigmoid(conv(cat, params["w2"]) + params["b2"])
    f1 = x1 * g1
    f2 = x2 * g2
    cat2 = jnp.concatenate([f1, f2], axis=-1)
    z = conv(cat2, params["w3"])
    inv_std = 1.0 / jnp.sqrt(params["bn_var"] + params["bn_eps"])
    pre = (z - params["bn_mean"]) * inv_std * params["bn_gamma"] + params["bn_beta"]
    post = jnp.maximum(pre, 0.0)
    nchw = lambda t: jnp.transpose(t, (0, 3, 1, 2))
    return nchw(pre), nchw(post), nchw(f1), nchw(f2)


if __name__ == "__main__":
    N, C1, C2, H, W, COUT = 2, 4, 4, 16, 16, 8
    CIN = C1 + C2

    key = jax.random.PRNGKey(0)
    ks = jax.random.split(key, 10)
    # PyTorch module takes inputs = [sensor1 (N,C1,H,W), sensor2 (N,C2,H,W)], NCHW.
    x1 = jax.random.normal(ks[0], (N, C1, H, W), jnp.float32)
    x2 = jax.random.normal(ks[1], (N, C2, H, W), jnp.float32)

    params = dict(
        w1=0.1 * jax.random.normal(ks[2], (3, 3, CIN, C1), jnp.float32),  # HWIO
        b1=0.1 * jax.random.normal(ks[3], (C1,), jnp.float32),
        w2=0.1 * jax.random.normal(ks[4], (3, 3, CIN, C2), jnp.float32),
        b2=0.1 * jax.random.normal(ks[5], (C2,), jnp.float32),
        w3=0.1 * jax.random.normal(ks[6], (3, 3, CIN, COUT), jnp.float32),
        bn_gamma=1.0 + 0.1 * jax.random.normal(ks[7], (COUT,), jnp.float32),
        bn_beta=0.1 * jax.random.normal(ks[8], (COUT,), jnp.float32),
        bn_mean=0.05 * jax.random.normal(ks[9], (COUT,), jnp.float32),
        bn_var=jnp.ones((COUT,), jnp.float32),
        bn_eps=1e-5,
    )

    outs = jax.block_until_ready(gated_fuser_forward(x1, x2, params))
    refs = jax.block_until_ready(reference_forward(x1, x2, params))

    assert len(outs) == 4
    # Tolerance 2e-3: the in-kernel dots use the default TPU f32 MXU path
    # (reference uses HIGHEST); with K = 9*Cin = 72 the measured drift is well
    # below this bound.
    for o, r in zip(outs, refs):
        assert o.shape == r.shape, (o.shape, r.shape)
        assert jnp.allclose(o, r, atol=2e-3, rtol=2e-3), float(jnp.max(jnp.abs(o - r)))

    print("KERNEL_OK")
</pallas_src>

<mosaic_0001>
module attributes {stable_mosaic.version = 11 : i64} {
  func.func @_gated_fuser_kernel(%arg0: i32, %arg1: memref<1x8x362xf32, #tpu.memory_space<vmem>>, %arg2: memref<9x8x8xf32, #tpu.memory_space<vmem>>, %arg3: memref<8x1xf32, #tpu.memory_space<vmem>>, %arg4: memref<9x8x8xf32, #tpu.memory_space<vmem>>, %arg5: memref<8x1xf32, #tpu.memory_space<vmem>>, %arg6: memref<8x1xf32, #tpu.memory_space<vmem>>, %arg7: memref<1x8x324xf32, #tpu.memory_space<vmem>>, %arg8: memref<1x8x286xf32, #tpu.memory_space<vmem>>, %arg9: memref<1x8x286xf32, #tpu.memory_space<vmem>>, %arg10: memref<8x324xf32, #tpu.memory_space<vmem>>) attributes {dimension_semantics = [#tpu.dimension_semantics<parallel>], iteration_bounds = array<i64: 2>, scalar_prefetch = 0 : i64, scratch_operands = 1 : i64, tpu.core_type = #tpu.core_type<tc>, window_params = [{transform_indices = @transform_0, window_bounds = array<i64: 1, 8, 362>}, {pipeline_mode = #tpu.pipeline_mode<synchronous>, transform_indices = @transform_1, window_bounds = array<i64: 9, 8, 8>}, {pipeline_mode = #tpu.pipeline_mode<synchronous>, transform_indices = @transform_2, window_bounds = array<i64: 8, 1>}, {pipeline_mode = #tpu.pipeline_mode<synchronous>, transform_indices = @transform_3, window_bounds = array<i64: 9, 8, 8>}, {pipeline_mode = #tpu.pipeline_mode<synchronous>, transform_indices = @transform_4, window_bounds = array<i64: 8, 1>}, {pipeline_mode = #tpu.pipeline_mode<synchronous>, transform_indices = @transform_5, window_bounds = array<i64: 8, 1>}, {transform_indices = @transform_6, window_bounds = array<i64: 1, 8, 324>}, {transform_indices = @transform_7, window_bounds = array<i64: 1, 8, 286>}, {transform_indices = @transform_8, window_bounds = array<i64: 1, 8, 286>}]} {
    %c0 = arith.constant 0 : index
    %c0_0 = arith.constant 0 : index
    %c0_1 = arith.constant 0 : index
    %0 = vector.load %arg1[%c0, %c0_0, %c0_1] : memref<1x8x362xf32, #tpu.memory_space<vmem>>, vector<1x8x324xf32>
    %1 = vector.shape_cast %0 : vector<1x8x324xf32> to vector<8x324xf32>
    %c0_2 = arith.constant 0 : index
    %c0_3 = arith.constant 0 : index
    %c0_4 = arith.constant 0 : index
    %2 = vector.load %arg2[%c0_2, %c0_3, %c0_4] : memref<9x8x8xf32, #tpu.memory_space<vmem>>, vector<1x8x8xf32>
    %3 = vector.shape_cast %2 : vector<1x8x8xf32> to vector<8x8xf32>
    %cst = arith.constant dense<0.000000e+00> : vector<8x324xf32>
    %4 = tpu.matmul %3, %1, %cst {dimension_numbers = #tpu.dot_dimension_numbers<[1], [0], [0], [1], [0, 0, 1, 1], [], []>} : vector<8x8xf32>, vector<8x324xf32>, vector<8x324xf32> -> vector<8x324xf32>
    %c0_5 = arith.constant 0 : index
    %c0_6 = arith.constant 0 : index
    %c1 = arith.constant 1 : index
    %5 = vector.load %arg1[%c0_5, %c0_6, %c1] : memref<1x8x362xf32, #tpu.memory_space<vmem>>, vector<1x8x324xf32>
    %6 = vector.shape_cast %5 : vector<1x8x324xf32> to vector<8x324xf32>
    %c1_7 = arith.constant 1 : index
    %c0_8 = arith.constant 0 : index
    %c0_9 = arith.constant 0 : index
    %7 = vector.load %arg2[%c1_7, %c0_8, %c0_9] : memref<9x8x8xf32, #tpu.memory_space<vmem>>, vector<1x8x8xf32>
    %8 = vector.shape_cast %7 : vector<1x8x8xf32> to vector<8x8xf32>
    %cst_10 = arith.constant dense<0.000000e+00> : vector<8x324xf32>
    %9 = tpu.matmul %8, %6, %cst_10 {dimension_numbers = #tpu.dot_dimension_numbers<[1], [0], [0], [1], [0, 0, 1, 1], [], []>} : vector<8x8xf32>, vector<8x324xf32>, vector<8x324xf32> -> vector<8x324xf32>
    %10 = arith.addf %4, %9 : vector<8x324xf32>
    %c0_11 = arith.constant 0 : index
    %c0_12 = arith.constant 0 : index
    %c2 = arith.constant 2 : index
    %11 = vector.load %arg1[%c0_11, %c0_12, %c2] : memref<1x8x362xf32, #tpu.memory_space<vmem>>, vector<1x8x324xf32>
    %12 = vector.shape_cast %11 : vector<1x8x324xf32> to vector<8x324xf32>
    %c2_13 = arith.constant 2 : index
    %c0_14 = arith.constant 0 : index
    %c0_15 = arith.constant 0 : index
    %13 = vector.load %arg2[%c2_13, %c0_14, %c0_15] : memref<9x8x8xf32, #tpu.memory_space<vmem>>, vector<1x8x8xf32>
    %14 = vector.shape_cast %13 : vector<1x8x8xf32> to vector<8x8xf32>
    %cst_16 = arith.constant dense<0.000000e+00> : vector<8x324xf32>
    %15 = tpu.matmul %14, %12, %cst_16 {dimension_numbers = #tpu.dot_dimension_numbers<[1], [0], [0], [1], [0, 0, 1, 1], [], []>} : vector<8x8xf32>, vector<8x324xf32>, vector<8x324xf32> -> vector<8x324xf32>
    %16 = arith.addf %10, %15 : vector<8x324xf32>
    %c0_17 = arith.constant 0 : index
    %c0_18 = arith.constant 0 : index
    %c18 = arith.constant 18 : index
    %17 = vector.load %arg1[%c0_17, %c0_18, %c18] : memref<1x8x362xf32, #tpu.memory_space<vmem>>, vector<1x8x324xf32>
    %18 = vector.shape_cast %17 : vector<1x8x324xf32> to vector<8x324xf32>
    %c3 = arith.constant 3 : index
    %c0_19 = arith.constant 0 : index
    %c0_20 = arith.constant 0 : index
    %19 = vector.load %arg2[%c3, %c0_19, %c0_20] : memref<9x8x8xf32, #tpu.memory_space<vmem>>, vector<1x8x8xf32>
    %20 = vector.shape_cast %19 : vector<1x8x8xf32> to vector<8x8xf32>
    %cst_21 = arith.constant dense<0.000000e+00> : vector<8x324xf32>
    %21 = tpu.matmul %20, %18, %cst_21 {dimension_numbers = #tpu.dot_dimension_numbers<[1], [0], [0], [1], [0, 0, 1, 1], [], []>} : vector<8x8xf32>, vector<8x324xf32>, vector<8x324xf32> -> vector<8x324xf32>
    %22 = arith.addf %16, %21 : vector<8x324xf32>
    %c0_22 = arith.constant 0 : index
    %c0_23 = arith.constant 0 : index
    %c19 = arith.constant 19 : index
    %23 = vector.load %arg1[%c0_22, %c0_23, %c19] : memref<1x8x362xf32, #tpu.memory_space<vmem>>, vector<1x8x324xf32>
    %24 = vector.shape_cast %23 : vector<1x8x324xf32> to vector<8x324xf32>
    %c4 = arith.constant 4 : index
    %c0_24 = arith.constant 0 : index
    %c0_25 = arith.constant 0 : index
    %25 = vector.load %arg2[%c4, %c0_24, %c0_25] : memref<9x8x8xf32, #tpu.memory_space<vmem>>, vector<1x8x8xf32>
    %26 = vector.shape_cast %25 : vector<1x8x8xf32> to vector<8x8xf32>
    %cst_26 = arith.constant dense<0.000000e+00> : vector<8x324xf32>
    %27 = tpu.matmul %26, %24, %cst_26 {dimension_numbers = #tpu.dot_dimension_numbers<[1], [0], [0], [1], [0, 0, 1, 1], [], []>} : vector<8x8xf32>, vector<8x324xf32>, vector<8x324xf32> -> vector<8x324xf32>
    %28 = arith.addf %22, %27 : vector<8x324xf32>
    %c0_27 = arith.constant 0 : index
    %c0_28 = arith.constant 0 : index
    %c20 = arith.constant 20 : index
    %29 = vector.load %arg1[%c0_27, %c0_28, %c20] : memref<1x8x362xf32, #tpu.memory_space<vmem>>, vector<1x8x324xf32>
    %30 = vector.shape_cast %29 : vector<1x8x324xf32> to vector<8x324xf32>
    %c5 = arith.constant 5 : index
    %c0_29 = arith.constant 0 : index
    %c0_30 = arith.constant 0 : index
    %31 = vector.load %arg2[%c5, %c0_29, %c0_30] : memref<9x8x8xf32, #tpu.memory_space<vmem>>, vector<1x8x8xf32>
    %32 = vector.shape_cast %31 : vector<1x8x8xf32> to vector<8x8xf32>
    %cst_31 = arith.constant dense<0.000000e+00> : vector<8x324xf32>
    %33 = tpu.matmul %32, %30, %cst_31 {dimension_numbers = #tpu.dot_dimension_numbers<[1], [0], [0], [1], [0, 0, 1, 1], [], []>} : vector<8x8xf32>, vector<8x324xf32>, vector<8x324xf32> -> vector<8x324xf32>
    %34 = arith.addf %28, %33 : vector<8x324xf32>
    %c0_32 = arith.constant 0 : index
    %c0_33 = arith.constant 0 : index
    %c36 = arith.constant 36 : index
    %35 = vector.load %arg1[%c0_32, %c0_33, %c36] : memref<1x8x362xf32, #tpu.memory_space<vmem>>, vector<1x8x324xf32>
    %36 = vector.shape_cast %35 : vector<1x8x324xf32> to vector<8x324xf32>
    %c6 = arith.constant 6 : index
    %c0_34 = arith.constant 0 : index
    %c0_35 = arith.constant 0 : index
    %37 = vector.load %arg2[%c6, %c0_34, %c0_35] : memref<9x8x8xf32, #tpu.memory_space<vmem>>, vector<1x8x8xf32>
    %38 = vector.shape_cast %37 : vector<1x8x8xf32> to vector<8x8xf32>
    %cst_36 = arith.constant dense<0.000000e+00> : vector<8x324xf32>
    %39 = tpu.matmul %38, %36, %cst_36 {dimension_numbers = #tpu.dot_dimension_numbers<[1], [0], [0], [1], [0, 0, 1, 1], [], []>} : vector<8x8xf32>, vector<8x324xf32>, vector<8x324xf32> -> vector<8x324xf32>
    %40 = arith.addf %34, %39 : vector<8x324xf32>
    %c0_37 = arith.constant 0 : index
    %c0_38 = arith.constant 0 : index
    %c37 = arith.constant 37 : index
    %41 = vector.load %arg1[%c0_37, %c0_38, %c37] : memref<1x8x362xf32, #tpu.memory_space<vmem>>, vector<1x8x324xf32>
    %42 = vector.shape_cast %41 : vector<1x8x324xf32> to vector<8x324xf32>
    %c7 = arith.constant 7 : index
    %c0_39 = arith.constant 0 : index
    %c0_40 = arith.constant 0 : index
    %43 = vector.load %arg2[%c7, %c0_39, %c0_40] : memref<9x8x8xf32, #tpu.memory_space<vmem>>, vector<1x8x8xf32>
    %44 = vector.shape_cast %43 : vector<1x8x8xf32> to vector<8x8xf32>
    %cst_41 = arith.constant dense<0.000000e+00> : vector<8x324xf32>
    %45 = tpu.matmul %44, %42, %cst_41 {dimension_numbers = #tpu.dot_dimension_numbers<[1], [0], [0], [1], [0, 0, 1, 1], [], []>} : vector<8x8xf32>, vector<8x324xf32>, vector<8x324xf32> -> vector<8x324xf32>
    %46 = arith.addf %40, %45 : vector<8x324xf32>
    %c0_42 = arith.constant 0 : index
    %c0_43 = arith.constant 0 : index
    %c38 = arith.constant 38 : index
    %47 = vector.load %arg1[%c0_42, %c0_43, %c38] : memref<1x8x362xf32, #tpu.memory_space<vmem>>, vector<1x8x324xf32>
    %48 = vector.shape_cast %47 : vector<1x8x324xf32> to vector<8x324xf32>
    %c8 = arith.constant 8 : index
    %c0_44 = arith.constant 0 : index
    %c0_45 = arith.constant 0 : index
    %49 = vector.load %arg2[%c8, %c0_44, %c0_45] : memref<9x8x8xf32, #tpu.memory_space<vmem>>, vector<1x8x8xf32>
    %50 = vector.shape_cast %49 : vector<1x8x8xf32> to vector<8x8xf32>
    %cst_46 = arith.constant dense<0.000000e+00> : vector<8x324xf32>
    %51 = tpu.matmul %50, %48, %cst_46 {dimension_numbers = #tpu.dot_dimension_numbers<[1], [0], [0], [1], [0, 0, 1, 1], [], []>} : vector<8x8xf32>, vector<8x324xf32>, vector<8x324xf32> -> vector<8x324xf32>
    %52 = arith.addf %46, %51 : vector<8x324xf32>
    %c0_47 = arith.constant 0 : index
    %c0_48 = arith.constant 0 : index
    %53 = vector.load %arg3[%c0_47, %c0_48] : memref<8x1xf32, #tpu.memory_space<vmem>>, vector<8x1xf32>
    %54 = vector.broadcast %53 : vector<8x1xf32> to vector<8x324xf32>
    %55 = arith.addf %52, %54 : vector<8x324xf32>
    %c0_49 = arith.constant 0 : index
    %c0_50 = arith.constant 0 : index
    %c19_51 = arith.constant 19 : index
    %56 = vector.load %arg1[%c0_49, %c0_50, %c19_51] : memref<1x8x362xf32, #tpu.memory_space<vmem>>, vector<1x8x324xf32>
    %57 = vector.shape_cast %56 : vector<1x8x324xf32> to vector<8x324xf32>
    %58 = arith.negf %55 : vector<8x324xf32>
    %59 = math.exp %58 : vector<8x324xf32>
    %cst_52 = arith.constant 1.000000e+00 : f32
    %60 = vector.broadcast %cst_52 : f32 to vector<8x324xf32>
    %61 = arith.addf %60, %59 : vector<8x324xf32>
    %62 = arith.divf %60, %61 : vector<8x324xf32>
    %63 = arith.mulf %57, %62 : vector<8x324xf32>
    %c0_53 = arith.constant 0 : index
    %c0_54 = arith.constant 0 : index
    %64 = vector.load %arg10[%c0_53, %c0_54] : memref<8x324xf32, #tpu.memory_space<vmem>>, vector<8x324xf32>
    tpu.vector_store %arg10[%c0_53, %c0_54], %63 {strides = array<i32>} : memref<8x324xf32, #tpu.memory_space<vmem>>, vector<8x324xf32>,
    %c0_55 = arith.constant 0 : index
    %c0_56 = arith.constant 0 : index
    %c0_57 = arith.constant 0 : index
    %65 = vector.load %arg7[%c0_55, %c0_56, %c0_57] : memref<1x8x324xf32, #tpu.memory_space<vmem>>, vector<1x8x324xf32>
    %66 = vector.shape_cast %65 : vector<1x8x324xf32> to vector<8x324xf32>
    %67 = vector.shape_cast %63 : vector<8x324xf32> to vector<1x8x324xf32>
    tpu.vector_store %arg7[%c0_55, %c0_56, %c0_57], %67 {strides = array<i32>} : memref<1x8x324xf32, #tpu.memory_space<vmem>>, vector<1x8x324xf32>,
    %c0_58 = arith.constant 0 : index
    %c0_59 = arith.constant 0 : index
    %68 = vector.load %arg10[%c0_58, %c0_59] : memref<8x324xf32, #tpu.memory_space<vmem>>, vector<8x286xf32>
    %c0_60 = arith.constant 0 : index
    %c0_61 = arith.constant 0 : index
    %c0_62 = arith.constant 0 : index
    %69 = vector.load %arg4[%c0_60, %c0_61, %c0_62] : memref<9x8x8xf32, #tpu.memory_space<vmem>>, vector<1x8x8xf32>
    %70 = vector.shape_cast %69 : vector<1x8x8xf32> to vector<8x8xf32>
    %cst_63 = arith.constant dense<0.000000e+00> : vector<8x286xf32>
    %71 = tpu.matmul %70, %68, %cst_63 {dimension_numbers = #tpu.dot_dimension_numbers<[1], [0], [0], [1], [0, 0, 1, 1], [], []>} : vector<8x8xf32>, vector<8x286xf32>, vector<8x286xf32> -> vector<8x286xf32>
    %c0_64 = arith.constant 0 : index
    %c1_65 = arith.constant 1 : index
    %72 = vector.load %arg10[%c0_64, %c1_65] : memref<8x324xf32, #tpu.memory_space<vmem>>, vector<8x286xf32>
    %c1_66 = arith.constant 1 : index
    %c0_67 = arith.constant 0 : index
    %c0_68 = arith.constant 0 : index
    %73 = vector.load %arg4[%c1_66, %c0_67, %c0_68] : memref<9x8x8xf32, #tpu.memory_space<vmem>>, vector<1x8x8xf32>
    %74 = vector.shape_cast %73 : vector<1x8x8xf32> to vector<8x8xf32>
    %cst_69 = arith.constant dense<0.000000e+00> : vector<8x286xf32>
    %75 = tpu.matmul %74, %72, %cst_69 {dimension_numbers = #tpu.dot_dimension_numbers<[1], [0], [0], [1], [0, 0, 1, 1], [], []>} : vector<8x8xf32>, vector<8x286xf32>, vector<8x286xf32> -> vector<8x286xf32>
    %76 = arith.addf %71, %75 : vector<8x286xf32>
    %c0_70 = arith.constant 0 : index
    %c2_71 = arith.constant 2 : index
    %77 = vector.load %arg10[%c0_70, %c2_71] : memref<8x324xf32, #tpu.memory_space<vmem>>, vector<8x286xf32>
    %c2_72 = arith.constant 2 : index
    %c0_73 = arith.constant 0 : index
    %c0_74 = arith.constant 0 : index
    %78 = vector.load %arg4[%c2_72, %c0_73, %c0_74] : memref<9x8x8xf32, #tpu.memory_space<vmem>>, vector<1x8x8xf32>
    %79 = vector.shape_cast %78 : vector<1x8x8xf32> to vector<8x8xf32>
    %cst_75 = arith.constant dense<0.000000e+00> : vector<8x286xf32>
    %80 = tpu.matmul %79, %77, %cst_75 {dimension_numbers = #tpu.dot_dimension_numbers<[1], [0], [0], [1], [0, 0, 1, 1], [], []>} : vector<8x8xf32>, vector<8x286xf32>, vector<8x286xf32> -> vector<8x286xf32>
    %81 = arith.addf %76, %80 : vector<8x286xf32>
    %c0_76 = arith.constant 0 : index
    %c18_77 = arith.constant 18 : index
    %82 = vector.load %arg10[%c0_76, %c18_77] : memref<8x324xf32, #tpu.memory_space<vmem>>, vector<8x286xf32>
    %c3_78 = arith.constant 3 : index
    %c0_79 = arith.constant 0 : index
    %c0_80 = arith.constant 0 : index
    %83 = vector.load %arg4[%c3_78, %c0_79, %c0_80] : memref<9x8x8xf32, #tpu.memory_space<vmem>>, vector<1x8x8xf32>
    %84 = vector.shape_cast %83 : vector<1x8x8xf32> to vector<8x8xf32>
    %cst_81 = arith.constant dense<0.000000e+00> : vector<8x286xf32>
    %85 = tpu.matmul %84, %82, %cst_81 {dimension_numbers = #tpu.dot_dimension_numbers<[1], [0], [0], [1], [0, 0, 1, 1], [], []>} : vector<8x8xf32>, vector<8x286xf32>, vector<8x286xf32> -> vector<8x286xf32>
    %86 = arith.addf %81, %85 : vector<8x286xf32>
    %c0_82 = arith.constant 0 : index
    %c19_83 = arith.constant 19 : index
    %87 = vector.load %arg10[%c0_82, %c19_83] : memref<8x324xf32, #tpu.memory_space<vmem>>, vector<8x286xf32>
    %c4_84 = arith.constant 4 : index
    %c0_85 = arith.constant 0 : index
    %c0_86 = arith.constant 0 : index
    %88 = vector.load %arg4[%c4_84, %c0_85, %c0_86] : memref<9x8x8xf32, #tpu.memory_space<vmem>>, vector<1x8x8xf32>
    %89 = vector.shape_cast %88 : vector<1x8x8xf32> to vector<8x8xf32>
    %cst_87 = arith.constant dense<0.000000e+00> : vector<8x286xf32>
    %90 = tpu.matmul %89, %87, %cst_87 {dimension_numbers = #tpu.dot_dimension_numbers<[1], [0], [0], [1], [0, 0, 1, 1], [], []>} : vector<8x8xf32>, vector<8x286xf32>, vector<8x286xf32> -> vector<8x286xf32>
    %91 = arith.addf %86, %90 : vector<8x286xf32>
    %c0_88 = arith.constant 0 : index
    %c20_89 = arith.constant 20 : index
    %92 = vector.load %arg10[%c0_88, %c20_89] : memref<8x324xf32, #tpu.memory_space<vmem>>, vector<8x286xf32>
    %c5_90 = arith.constant 5 : index
    %c0_91 = arith.constant 0 : index
    %c0_92 = arith.constant 0 : index
    %93 = vector.load %arg4[%c5_90, %c0_91, %c0_92] : memref<9x8x8xf32, #tpu.memory_space<vmem>>, vector<1x8x8xf32>
    %94 = vector.shape_cast %93 : vector<1x8x8xf32> to vector<8x8xf32>
    %cst_93 = arith.constant dense<0.000000e+00> : vector<8x286xf32>
    %95 = tpu.matmul %94, %92, %cst_93 {dimension_numbers = #tpu.dot_dimension_numbers<[1], [0], [0], [1], [0, 0, 1, 1], [], []>} : vector<8x8xf32>, vector<8x286xf32>, vector<8x286xf32> -> vector<8x286xf32>
    %96 = arith.addf %91, %95 : vector<8x286xf32>
    %c0_94 = arith.constant 0 : index
    %c36_95 = arith.constant 36 : index
    %97 = vector.load %arg10[%c0_94, %c36_95] : memref<8x324xf32, #tpu.memory_space<vmem>>, vector<8x286xf32>
    %c6_96 = arith.constant 6 : index
    %c0_97 = arith.constant 0 : index
    %c0_98 = arith.constant 0 : index
    %98 = vector.load %arg4[%c6_96, %c0_97, %c0_98] : memref<9x8x8xf32, #tpu.memory_space<vmem>>, vector<1x8x8xf32>
    %99 = vector.shape_cast %98 : vector<1x8x8xf32> to vector<8x8xf32>
    %cst_99 = arith.constant dense<0.000000e+00> : vector<8x286xf32>
    %100 = tpu.matmul %99, %97, %cst_99 {dimension_numbers = #tpu.dot_dimension_numbers<[1], [0], [0], [1], [0, 0, 1, 1], [], []>} : vector<8x8xf32>, vector<8x286xf32>, vector<8x286xf32> -> vector<8x286xf32>
    %101 = arith.addf %96, %100 : vector<8x286xf32>
    %c0_100 = arith.constant 0 : index
    %c37_101 = arith.constant 37 : index
    %102 = vector.load %arg10[%c0_100, %c37_101] : memref<8x324xf32, #tpu.memory_space<vmem>>, vector<8x286xf32>
    %c7_102 = arith.constant 7 : index
    %c0_103 = arith.constant 0 : index
    %c0_104 = arith.constant 0 : index
    %103 = vector.load %arg4[%c7_102, %c0_103, %c0_104] : memref<9x8x8xf32, #tpu.memory_space<vmem>>, vector<1x8x8xf32>
    %104 = vector.shape_cast %103 : vector<1x8x8xf32> to vector<8x8xf32>
    %cst_105 = arith.constant dense<0.000000e+00> : vector<8x286xf32>
    %105 = tpu.matmul %104, %102, %cst_105 {dimension_numbers = #tpu.dot_dimension_numbers<[1], [0], [0], [1], [0, 0, 1, 1], [], []>} : vector<8x8xf32>, vector<8x286xf32>, vector<8x286xf32> -> vector<8x286xf32>
    %106 = arith.addf %101, %105 : vector<8x286xf32>
    %c0_106 = arith.constant 0 : index
    %c38_107 = arith.constant 38 : index
    %107 = vector.load %arg10[%c0_106, %c38_107] : memref<8x324xf32, #tpu.memory_space<vmem>>, vector<8x286xf32>
    %c8_108 = arith.constant 8 : index
    %c0_109 = arith.constant 0 : index
    %c0_110 = arith.constant 0 : index
    %108 = vector.load %arg4[%c8_108, %c0_109, %c0_110] : memref<9x8x8xf32, #tpu.memory_space<vmem>>, vector<1x8x8xf32>
    %109 = vector.shape_cast %108 : vector<1x8x8xf32> to vector<8x8xf32>
    %cst_111 = arith.constant dense<0.000000e+00> : vector<8x286xf32>
    %110 = tpu.matmul %109, %107, %cst_111 {dimension_numbers = #tpu.dot_dimension_numbers<[1], [0], [0], [1], [0, 0, 1, 1], [], []>} : vector<8x8xf32>, vector<8x286xf32>, vector<8x286xf32> -> vector<8x286xf32>
    %111 = arith.addf %106, %110 : vector<8x286xf32>
    %c0_112 = arith.constant 0 : index
    %c0_113 = arith.constant 0 : index
    %112 = vector.load %arg5[%c0_112, %c0_113] : memref<8x1xf32, #tpu.memory_space<vmem>>, vector<8x1xf32>
    %113 = vector.broadcast %112 : vector<8x1xf32> to vector<8x286xf32>
    %114 = arith.mulf %111, %113 : vector<8x286xf32>
    %c0_114 = arith.constant 0 : index
    %c0_115 = arith.constant 0 : index
    %115 = vector.load %arg6[%c0_114, %c0_115] : memref<8x1xf32, #tpu.memory_space<vmem>>, vector<8x1xf32>
    %116 = vector.broadcast %115 : vector<8x1xf32> to vector<8x286xf32>
    %117 = arith.addf %114, %116 : vector<8x286xf32>
    %c0_116 = arith.constant 0 : index
    %c0_117 = arith.constant 0 : index
    %c0_118 = arith.constant 0 : index
    %118 = vector.load %arg8[%c0_116, %c0_117, %c0_118] : memref<1x8x286xf32, #tpu.memory_space<vmem>>, vector<1x8x286xf32>
    %119 = vector.shape_cast %118 : vector<1x8x286xf32> to vector<8x286xf32>
    %120 = vector.shape_cast %117 : vector<8x286xf32> to vector<1x8x286xf32>
    tpu.vector_store %arg8[%c0_116, %c0_117, %c0_118], %120 {strides = array<i32>} : memref<1x8x286xf32, #tpu.memory_space<vmem>>, vector<1x8x286xf32>,
    %cst_119 = arith.constant 0.000000e+00 : f32
    %121 = vector.broadcast %cst_119 : f32 to vector<8x286xf32>
    %122 = arith.maximumf %117, %121 : vector<8x286xf32>
    %c0_120 = arith.constant 0 : index
    %c0_121 = arith.constant 0 : index
    %c0_122 = arith.constant 0 : index
    %123 = vector.load %arg9[%c0_120, %c0_121, %c0_122] : memref<1x8x286xf32, #tpu.memory_space<vmem>>, vector<1x8x286xf32>
    %124 = vector.shape_cast %123 : vector<1x8x286xf32> to vector<8x286xf32>
    %125 = vector.shape_cast %122 : vector<8x286xf32> to vector<1x8x286xf32>
    tpu.vector_store %arg9[%c0_120, %c0_121, %c0_122], %125 {strides = array<i32>} : memref<1x8x286xf32, #tpu.memory_space<vmem>>, vector<1x8x286xf32>,
    return
  }
  func.func @transform_0(%arg0: i32) -> (i32, i32, i32) {
    %c0_i32 = arith.constant 0 : i32
    %c0_i32_0 = arith.constant 0 : i32
    %c0_i32_1 = arith.constant 0 : i32
    return %arg0, %c0_i32, %c0_i32_0 : i32, i32, i32
  }
  func.func @transform_1(%arg0: i32) -> (i32, i32, i32) {
    %c0_i32 = arith.constant 0 : i32
    %c0_i32_0 = arith.constant 0 : i32
    %c0_i32_1 = arith.constant 0 : i32
    %c0_i32_2 = arith.constant 0 : i32
    return %c0_i32, %c0_i32_0, %c0_i32_1 : i32, i32, i32
  }
  func.func @transform_2(%arg0: i32) -> (i32, i32) {
    %c0_i32 = arith.constant 0 : i32
    %c0_i32_0 = arith.constant 0 : i32
    %c0_i32_1 = arith.constant 0 : i32
    return %c0_i32, %c0_i32_0 : i32, i32
  }
  func.func @transform_3(%arg0: i32) -> (i32, i32, i32) {
    %c0_i32 = arith.constant 0 : i32
    %c0_i32_0 = arith.constant 0 : i32
    %c0_i32_1 = arith.constant 0 : i32
    %c0_i32_2 = arith.constant 0 : i32
    return %c0_i32, %c0_i32_0, %c0_i32_1 : i32, i32, i32
  }
  func.func @transform_4(%arg0: i32) -> (i32, i32) {
    %c0_i32 = arith.constant 0 : i32
    %c0_i32_0 = arith.constant 0 : i32
    %c0_i32_1 = arith.constant 0 : i32
    return %c0_i32, %c0_i32_0 : i32, i32
  }
  func.func @transform_5(%arg0: i32) -> (i32, i32) {
    %c0_i32 = arith.constant 0 : i32
    %c0_i32_0 = arith.constant 0 : i32
    %c0_i32_1 = arith.constant 0 : i32
    return %c0_i32, %c0_i32_0 : i32, i32
  }
  func.func @transform_6(%arg0: i32) -> (i32, i32, i32) {
    %c0_i32 = arith.constant 0 : i32
    %c0_i32_0 = arith.constant 0 : i32
    %c0_i32_1 = arith.constant 0 : i32
    return %arg0, %c0_i32, %c0_i32_0 : i32, i32, i32
  }
  func.func @transform_7(%arg0: i32) -> (i32, i32, i32) {
    %c0_i32 = arith.constant 0 : i32
    %c0_i32_0 = arith.constant 0 : i32
    %c0_i32_1 = arith.constant 0 : i32
    return %arg0, %c0_i32, %c0_i32_0 : i32, i32, i32
  }
  func.func @transform_8(%arg0: i32) -> (i32, i32, i32) {
    %c0_i32 = arith.constant 0 : i32
    %c0_i32_0 = arith.constant 0 : i32
    %c0_i32_1 = arith.constant 0 : i32
    return %arg0, %c0_i32, %c0_i32_0 : i32, i32, i32
  }
}

</mosaic_0001>

<bundles_post_ra>
// kernel: tpu_custom_call.1
= control target key start
LH: loop header
LB: loop body
LE: loop exit
PB: predicated region body
PF: predicated region fallthrough
CT: control target
= control target key end

     0   :  { %s2835_s0 = inlined_call_operand.vmem [shape: f32[2,8,362], index: 0, kind: input, shape index: {}]   ;;  %s2836_s1 = inlined_call_operand.vmem [shape: f32[9,8,8], index: 1, kind: input, shape index: {}]   ;;  %s2837_s2 = inlined_call_operand.vmem [shape: f32[8,1], index: 2, kind: input, shape index: {}]   ;;  %s2838_s3 = inlined_call_operand.vmem [shape: f32[9,8,8], index: 3, kind: input, shape index: {}]   ;;  %s2839_s4 = inlined_call_operand.vmem [shape: f32[8,1], index: 4, kind: input, shape index: {}]   ;;  %s2840_s5 = inlined_call_operand.vmem [shape: f32[8,1], index: 5, kind: input, shape index: {}]   ;;  %s2841_s6 = inlined_call_operand.hbm [shape: f32[2,8,324], index: 6, kind: output, shape index: {0}]   ;;  %s2842_s7 = inlined_call_operand.hbm [shape: f32[2,8,286], index: 7, kind: output, shape index: {1}]   ;;  %s2843_s8 = inlined_call_operand.hbm [shape: f32[2,8,286], index: 8, kind: output, shape index: {2}]  }
   0x1   :  { %2850 = sst [smem:[#allocation10_spill]] %s2835_s0 }
   0x2   :  { %2851 = sst [smem:[#allocation11_spill]] %s2836_s1 }
   0x3   :  { %2852 = sst [smem:[#allocation12_spill]] %s2837_s2 }
   0x4   :  { %14 = vsyncpa [#allocation4], 0 }
   0x5   :  { %16 = vsyncpa [#allocation4 + $0x1], 0 }
   0x6   :  { %17 = vsyncpa [#allocation6], 0 }
   0x7   :  { %19 = vsyncpa [#allocation6 + $0x1], 0  ;;  %s2461_s27 = smov 0   ;;  %s2463_s28 = smov 0  }
   0x8   :  { %s2465_s29 = smov 0   ;;  %s2467_s30 = smov 0  }
   0x9 LB: > { %s2482_s9 = sadd.s32 4294967295, %s2404_s30   ;;  %s2849_s10 = sadd.s32 4294967294, %s2404_s30   ;;  %s2404_s30 = sphi %s2467_s30, %s2872_s30   ;;  %s2400_s29 = sphi %s2465_s29, %s2871_s29   ;;  %s2396_s28 = sphi %s2463_s28, %s2870_s28   ;;  %s2392_s27 = sphi %s2461_s27, %s2869_s27  }
   0xa   : > { %s2486_s11 = sadd.s32 1, %s2404_s30   ;;  %s163_s12 = sadd.s32 1, %s2400_s29 }
   0xb   : > { %s160_s13 = ssub.s32 %s2404_s30, %s2486_s11  ;;  %p173_p0 = scmp.ne.s32.totalorder %s2400_s29, %s2396_s28 }
   0xc   : > { %p161_p1 = scmp.eq.s32.totalorder %s160_s13, 0  ;;  %p174_p2 = scmp.eq.s32.totalorder %s2482_s9, 1 }
   0xd   : > { %p179_p3 = scmp.ne.s32.totalorder %s2396_s28, %s2392_s27  ;;  %p180_p4 = scmp.eq.s32.totalorder %s2849_s10, 1 }
   0xe   : > { %s2499_s14 = scalar_select %p161_p1, %s2400_s29, %s163_s12  }
   0xf   : > { %p2501_p5 = por %p174_p2, %p173_p0  ;;  %p2505_p6 = por %p180_p4, %p179_p3 }
  0x10   : > { %p2044_p7 = scmp.ge.s32.totalorder %s2404_s30, 1  ;;  %p273_p8 = scmp.lt.s32.totalorder %s2404_s30, 3 }
  0x12   : > { %p274_p9 = pnand %p2044_p7, %p273_p8 }
  0x13   : > { %p317_p10 = scmp.lt.s32.totalorder (!%p274_p9), %s2482_s9, 1  ;;  %s2855_s0 = sld [smem:[#allocation10_spill]] (!%p274_p9) }
  0x14   : > { %277 = sbr.rel (%p274_p9) target bundleno = 918 (0x396), region = 44  ;;  %s2406_s22 = smov (!%p274_p9), 127  }
  0x15   : > { %s2407_s23 = smov (!%p274_p9), 126   ;;  %s2408_s24 = smov (!%p274_p9), 110  }
  0x16   : > { %s2409_s25 = smov (!%p274_p9), 109   ;;  %s2410_s26 = smov (!%p274_p9), 108  }
  0x17   : > { %s2411_s12 = smov (!%p274_p9), 92   ;;  %s2412_s13 = smov (!%p274_p9), 91  }
  0x18   : > { %s2856_s1 = sld [smem:[#allocation11_spill]] (!%p274_p9)  ;;  %s300_s19 = sand.u32 (!%p274_p9), 1, %s2396_s28  }
  0x19   : > { %s318_s17 = scalar_select %p317_p10, %s2482_s9, 1  ;;  %vm343_vm0 = vcmask 64512   ;;  %vm478_vm1 = vcmask 1031168   ;;  %vm2848_vm2 = vcmask 900096   ;;  %vm337_vm3 = vcmask 1039360  }
  0x1a   : > { %vm2847_vm4 = vcmask 883712   ;;  %vm638_vm5 = vcmask 891904   ;;  %vm2846_vm6 = vcmask 752640   ;;  %s2857_s2 = sld [smem:[#allocation12_spill]]  ;;  %v2414_v50 = vmov 0   ;;  %s2638_s20 = smul.u32 24, %s300_s19 }
  0x1b   : > { %s2125_s18 = smul.u32 24, %s318_s17  ;;  %s2413_s17 = smov 90   ;;  %2228 = vset.pattern.permute.xlu1 %v2414_v50  ;;  %2269 = vset.pattern.permute.xlu0 %v2414_v50  ;;  %vm2845_vm7 = vcmask 744448   ;;  %vm2844_vm8 = vcmask 736256  }
  0x1d   : > { %s321_s21 = scalar_lea.vmem %s2855_s0, %s2125_s18  ;;  %s2415_s18 = smov 19  }
  0x1e   : > { %v2516_v0 = vld [vmem:[%s321_s21] sm:$0xff]  ;;  %v2518_v1 = vld [vmem:[%s321_s21 + $0x10] sm:$0xff]  ;;  %v2520_v2 = vld [vmem:[%s321_s21 + $0x8] sm:$0xff]  ;;  %s2643_s21 = scalar_lea.vmem [#allocation3], %s2638_s20 }
  0x1f   : > { %v2188_v3 = vpack.i.bf16 %v2516_v0, %v2518_v1  ;;  %v2193_v4 = vpack.i.bf16 %v2520_v2, %v2516_v0  ;;  %425 = vmatpush.msra.mxu3 %v2516_v0  ;;  %v2198_v5 = vpack.i.bf16 %v2518_v1, %v2520_v2  ;;  %v325_v6 = vld [vmem:[%s2856_s1] sm:$0xff]  ;;  %v2046_v16 = vld [vmem:[%s2856_s1 + $0x8] sm:$0xff]  ;;  %v2053_v26 = vld [vmem:[%s2856_s1 + $0x10] sm:$0xff] }
  0x20   : > { %2050 = vmatmul.msk.f32.vlgmr.msra.gmra.mxu3 %vm343_vm0, %v325_v6  ;;  %v2057_v33 = vld [vmem:[%s2856_s1 + $0x18] sm:$0xff]  ;;  %v2061_v41 = vld [vmem:[%s2856_s1 + $0x20] sm:$0xff]  ;;  %v2065_v45 = vld [vmem:[%s2856_s1 + $0x28] sm:$0xff] }
  0x21   : > { %2189 = vrot.lane.b32.xlu0 %v2188_v3, %s2406_s22  ;;  %2194 = vrot.lane.b32.xlu1 %v2193_v4, %s2407_s23  ;;  %v1030_v48 = vld [vmem:[%s2857_s2] sm:$0xff]  ;;  %v2069_v53 = vld [vmem:[%s2856_s1 + $0x30] sm:$0xff] }
  0x22   : > { %2199 = vrot.lane.b32.xlu2 %v2198_v5, %s2408_s24  ;;  %v2073_v61 = vld [vmem:[%s2856_s1 + $0x38] sm:$0xff] }
  0x29   : > { %333 = vrot.lane.b32.xlu0 %v2520_v2, %s2406_s22  ;;  %476 = vrot.lane.b32.xlu1 %v2518_v1, %s2407_s23 }
  0x2a   : > { %552 = vrot.lane.b32.xlu2 %v2516_v0, %s2408_s24 }
  0x31   : > { %2204 = vrot.lane.b32.xlu0 %v2188_v3, %s2409_s25  ;;  %634 = vrot.lane.b32.xlu1 %v2520_v2, %s2409_s25 }
  0x32   : > { %2209 = vrot.lane.b32.xlu2 %v2193_v4, %s2410_s26 }
  0x39   : > { %2214 = vrot.lane.b32.xlu0 %v2193_v4, %s2411_s12  ;;  %716 = vrot.lane.b32.xlu1 %v2518_v1, %s2410_s26 }
  0x3a   : > { %796 = vrot.lane.b32.xlu2 %v2518_v1, %s2411_s12 }
  0x41   : > { %2219 = vrot.lane.b32.xlu0 %v2198_v5, %s2412_s13  ;;  %872 = vrot.lane.b32.xlu1 %v2516_v0, %s2412_s13 }
  0x42   : > { %2224 = vrot.lane.b32.xlu2 %v2188_v3, %s2413_s17  ;;  %v2077_v3 = vld [vmem:[%s2856_s1 + $0x40] sm:$0xff]  ;;  %s2302_s1 = scalar_lea.hbm %s2841_s6, 48 }
  0x49   : > { %954 = vrot.lane.b32.xlu0 %v2520_v2, %s2413_s17  ;;  %1033 = vperm.xlu1 %2228, %v1030_v48  }
  0x7c   : > { %v2200_v7 = vpop.permute.xlu2 %2199 }
  0x7d   : > { %v2202_v9 = vunpack.i.h.bf16 %v2200_v7  ;;  %v2201_v10 = vunpack.i.l.bf16 %v2200_v7 }
  0x7f   : > { %v560_v18 = vsel %vm2848_vm2, %v2201_v10, %v2202_v9 }
  0x84   : > { %v553_v8 = vpop.permute.xlu2 %552 }
  0x85   : > { %v559_v29 = vsel %vm2848_vm2, %v553_v8, %v2201_v10 }
  0x8c   : > { %v2210_v19 = vpop.permute.xlu2 %2209 }
  0x8d   : > { %v2212_v23 = vunpack.i.h.bf16 %v2210_v19  ;;  %v2211_v28 = vunpack.i.l.bf16 %v2210_v19 }
  0x8f   : > { %v719_v30 = vsel %vm2847_vm4, %v2211_v28, %v2212_v23 }
  0x93   : > { %v2190_v11 = vpop.permute.xlu0 %2189  ;;  %v2195_v12 = vpop.permute.xlu1 %2194 }
  0x94   : > { %v2197_v13 = vunpack.i.h.bf16 %v2195_v12  ;;  %v2196_v14 = vunpack.i.l.bf16 %v2195_v12  ;;  %v2191_v15 = vunpack.i.l.bf16 %v2190_v11  ;;  %v2192_v20 = vunpack.i.h.bf16 %v2190_v11  ;;  %v797_v38 = vpop.permute.xlu2 %796 }
  0x96   : > { %402 = vmatpush.msra.mxu2 %v2191_v15  ;;  %v479_v17 = vsel %vm478_vm1, %v2196_v14, %v2197_v13 }
  0x97   : > { %2049 = vmatmul.msk.f32.vlgmr.msra.gmra.mxu2 %vm343_vm0, %v2046_v16 }
  0x98   : > { %502 = vmatpush.msrb.mxu2 %v479_v17 }
  0x9a   : > { %602 = vmatpush.msra.mxu2 %v560_v18 }
  0x9b   : > { %v334_v21 = vpop.permute.xlu0 %333  ;;  %v477_v22 = vpop.permute.xlu1 %476 }
  0x9c   : > { %v338_v24 = vsel %vm337_vm3, %v2192_v20, %v334_v21  ;;  %v339_v25 = vsel %vm337_vm3, %v334_v21, %v2191_v15  ;;  %v480_v27 = vsel %vm478_vm1, %v2197_v13, %v477_v22  ;;  %v2225_v49 = vpop.permute.xlu2 %2224 }
  0x9d   : > { %362 = vmatpush.msra.mxu0 %v338_v24  ;;  %382 = vmatpush.msra.mxu1 %v339_v25  ;;  %v2226_v58 = vunpack.i.l.bf16 %v2225_v49  ;;  %v2227_v59 = vunpack.i.h.bf16 %v2225_v49 }
  0x9e   : > { %2047 = vmatmul.msk.f32.vlgmr.msra.gmra.mxu0 %vm343_vm0, %v2046_v16  ;;  %2048 = vmatmul.msk.f32.vlgmr.msra.gmra.mxu1 %vm343_vm0, %v2046_v16 }
  0x9f   : > { %2054 = vmatmul.msk.f32.vlgmr.msrb.gmra.mxu2 %vm343_vm0, %v2053_v26  ;;  %522 = vmatpush.msrb.mxu3 %v480_v27 }
  0xa0   : > { %2055 = vmatmul.msk.f32.vlgmr.msrb.gmra.mxu3 %vm343_vm0, %v2053_v26  ;;  %445 = vmatpush.msrb.mxu0 %v2520_v2 }
  0xa1   : > { %465 = vmatpush.msrb.mxu1 %v2518_v1  ;;  %622 = vmatpush.msra.mxu3 %v2202_v9 }
  0xa2   : > { %542 = vmatpush.msra.mxu0 %v477_v22 }
  0xa3   : > { %582 = vmatpush.msra.mxu1 %v559_v29  ;;  %v2205_v31 = vpop.permute.xlu0 %2204  ;;  %v635_v32 = vpop.permute.xlu1 %634  ;;  %742 = vmatpush.msrb.mxu3 %v719_v30 }
  0xa4   : > { %v2207_v34 = vunpack.i.h.bf16 %v2205_v31  ;;  %v2206_v35 = vunpack.i.l.bf16 %v2205_v31  ;;  %v427_v5 = vpop.f32.mrf.mxu3 }
  0xa6   : > { %2051 = vmatmul.msk.f32.vlgmr.msrb.gmra.mxu0 %vm343_vm0, %v325_v6  ;;  %2052 = vmatmul.msk.f32.vlgmr.msrb.gmra.mxu1 %vm343_vm0, %v325_v6  ;;  %v639_v36 = vsel %vm638_vm5, %v2207_v34, %v635_v32  ;;  %v640_v37 = vsel %vm638_vm5, %v635_v32, %v2206_v35 }
  0xa7   : > { %2059 = vmatmul.msk.f32.vlgmr.msra.gmra.mxu2 %vm343_vm0, %v2057_v33  ;;  %662 = vmatpush.msrb.mxu0 %v639_v36 }
  0xa8   : > { %2060 = vmatmul.msk.f32.vlgmr.msra.gmra.mxu3 %vm343_vm0, %v2057_v33  ;;  %702 = vmatpush.msrb.mxu2 %v2206_v35 }
  0xa9   : > { %682 = vmatpush.msrb.mxu1 %v640_v37 }
  0xab   : > { %v2215_v39 = vpop.permute.xlu0 %2214  ;;  %v717_v40 = vpop.permute.xlu1 %716 }
  0xac   : > { %v2217_v42 = vunpack.i.h.bf16 %v2215_v39  ;;  %v2216_v43 = vunpack.i.l.bf16 %v2215_v39  ;;  %v720_v44 = vsel %vm2847_vm4, %v2212_v23, %v717_v40 }
  0xae   : > { %2056 = vmatmul.msk.f32.vlgmr.msra.gmra.mxu0 %vm343_vm0, %v2053_v26  ;;  %2058 = vmatmul.msk.f32.vlgmr.msra.gmra.mxu1 %vm343_vm0, %v2057_v33  ;;  %v800_v46 = vsel %vm2846_vm6, %v2217_v42, %v797_v38  ;;  %v799_v47 = vsel %vm2846_vm6, %v2216_v43, %v2217_v42 }
  0xaf   : > { %2064 = vmatmul.msk.f32.vlgmr.msrb.gmra.mxu2 %vm343_vm0, %v2061_v41  ;;  %762 = vmatpush.msra.mxu0 %v720_v44 }
  0xb0   : > { %2066 = vmatmul.msk.f32.vlgmr.msrb.gmra.mxu3 %vm343_vm0, %v2065_v45  ;;  %822 = vmatpush.msra.mxu2 %v799_v47 }
  0xb1   : > { %842 = vmatpush.msra.mxu3 %v800_v46  ;;  %782 = vmatpush.msra.mxu1 %v717_v40 }
  0xb3   : > { %v2220_v51 = vpop.permute.xlu0 %2219  ;;  %v873_v52 = vpop.permute.xlu1 %872 }
  0xb4   : > { %v2222_v54 = vunpack.i.h.bf16 %v2220_v51  ;;  %v2221_v55 = vunpack.i.l.bf16 %v2220_v51 }
  0xb6   : > { %2062 = vmatmul.msk.f32.vlgmr.msrb.gmra.mxu0 %vm343_vm0, %v2061_v41  ;;  %2063 = vmatmul.msk.f32.vlgmr.msrb.gmra.mxu1 %vm343_vm0, %v2061_v41  ;;  %v879_v56 = vsel %vm2845_vm7, %v873_v52, %v2221_v55  ;;  %v880_v57 = vsel %vm2845_vm7, %v2221_v55, %v2222_v54 }
  0xb7   : > { %2070 = vmatmul.msk.f32.vlgmr.msra.gmra.mxu2 %vm343_vm0, %v2069_v53  ;;  %862 = vmatpush.msrb.mxu0 %v797_v38 }
  0xb8   : > { %2071 = vmatmul.msk.f32.vlgmr.msra.gmra.mxu3 %vm343_vm0, %v2069_v53  ;;  %922 = vmatpush.msrb.mxu2 %v880_v57 }
  0xb9   : > { %942 = vmatpush.msrb.mxu3 %v2222_v54  ;;  %902 = vmatpush.msrb.mxu1 %v879_v56 }
  0xba   : > { %1022 = vmatpush.msra.mxu2 %v2226_v58 }
  0xbb   : > { %v955_v60 = vpop.permute.xlu0 %954  ;;  %v1034_v50 = vpop.permute.xlu1 %1033 }
  0xbc   : > { %v959_v62 = vsel %vm2844_vm8, %v2227_v59, %v955_v60  ;;  %v960_v63 = vsel %vm2844_vm8, %v955_v60, %v2226_v58 }
  0xbe   : > { %2067 = vmatmul.msk.f32.vlgmr.msra.gmra.mxu0 %vm343_vm0, %v2065_v45  ;;  %2068 = vmatmul.msk.f32.vlgmr.msra.gmra.mxu1 %vm343_vm0, %v2065_v45 }
  0xbf   : > { %2075 = vmatmul.msk.f32.vlgmr.msrb.gmra.mxu2 %vm343_vm0, %v2073_v61  ;;  %982 = vmatpush.msra.mxu0 %v959_v62 }
  0xc0   : > { %2076 = vmatmul.msk.f32.vlgmr.msrb.gmra.mxu3 %vm343_vm0, %v2073_v61  ;;  %1002 = vmatpush.msra.mxu1 %v960_v63 }
  0xc6   : > { %2072 = vmatmul.msk.f32.vlgmr.msrb.gmra.mxu0 %vm343_vm0, %v2069_v53  ;;  %2074 = vmatmul.msk.f32.vlgmr.msrb.gmra.mxu1 %vm343_vm0, %v2073_v61 }
  0xc7   : > { %2080 = vmatmul.msk.f32.vlgmr.msra.gmra.mxu2 %vm343_vm0, %v2077_v3 }
  0xce   : > { %2078 = vmatmul.msk.f32.vlgmr.msra.gmra.mxu0 %vm343_vm0, %v2077_v3  ;;  %2079 = vmatmul.msk.f32.vlgmr.msra.gmra.mxu1 %vm343_vm0, %v2077_v3 }
 0x11a   : > { %v404_v4 = vpop.f32.mrf.mxu2 }
 0x11b   : > { %v364_v6 = vpop.f32.mrf.mxu0  ;;  %v384_v7 = vpop.f32.mrf.mxu1 }
 0x11c   : > { %v428_v21 = vadd.f32 %v427_v5, %v364_v6 }
 0x122   : > { %v504_v8 = vpop.f32.mrf.mxu2 }
 0x123   : > { %v447_v9 = vpop.f32.mrf.mxu0  ;;  %v467_v10 = vpop.f32.mrf.mxu1  ;;  %v547_v28 = vadd.f32 %v504_v8, %v428_v21 }
 0x124   : > { %v524_v11 = vpop.f32.mrf.mxu3  ;;  %v468_v20 = vadd.f32 %v467_v10, %v404_v4  ;;  %v448_v22 = vadd.f32 %v447_v9, %v384_v7 }
 0x126   : > { %v548_v29 = vadd.f32 %v524_v11, %v448_v22 }
 0x12a   : > { %v604_v12 = vpop.f32.mrf.mxu2 }
 0x12b   : > { %v544_v13 = vpop.f32.mrf.mxu0  ;;  %v584_v14 = vpop.f32.mrf.mxu1  ;;  %v628_v31 = vadd.f32 %v604_v12, %v548_v29 }
 0x12c   : > { %v624_v15 = vpop.f32.mrf.mxu3  ;;  %v549_v24 = vadd.f32 %v544_v13, %v468_v20  ;;  %v627_v32 = vadd.f32 %v584_v14, %v547_v28 }
 0x12e   : > { %v629_v30 = vadd.f32 %v624_v15, %v549_v24 }
 0x132   : > { %v704_v16 = vpop.f32.mrf.mxu2 }
 0x133   : > { %v664_v17 = vpop.f32.mrf.mxu0  ;;  %v684_v18 = vpop.f32.mrf.mxu1  ;;  %v709_v33 = vadd.f32 %v704_v16, %v629_v30 }
 0x134   : > { %v744_v19 = vpop.f32.mrf.mxu3  ;;  %v707_v34 = vadd.f32 %v664_v17, %v627_v32  ;;  %v708_v35 = vadd.f32 %v684_v18, %v628_v31 }
 0x136   : > { %v787_v42 = vadd.f32 %v744_v19, %v707_v34 }
 0x13a   : > { %v824_v23 = vpop.f32.mrf.mxu2 }
 0x13b   : > { %v764_v25 = vpop.f32.mrf.mxu0  ;;  %v784_v26 = vpop.f32.mrf.mxu1  ;;  %v867_v44 = vadd.f32 %v824_v23, %v787_v42 }
 0x13c   : > { %v844_v27 = vpop.f32.mrf.mxu3  ;;  %v789_v37 = vadd.f32 %v784_v26, %v709_v33  ;;  %v788_v40 = vadd.f32 %v764_v25, %v708_v35 }
 0x13e   : > { %v868_v45 = vadd.f32 %v844_v27, %v788_v40 }
 0x142   : > { %v924_v36 = vpop.f32.mrf.mxu2 }
 0x143   : > { %v864_v38 = vpop.f32.mrf.mxu0  ;;  %v904_v39 = vpop.f32.mrf.mxu1  ;;  %v948_v47 = vadd.f32 %v924_v36, %v868_v45 }
 0x144   : > { %v869_v41 = vadd.f32 %v864_v38, %v789_v37  ;;  %v944_v43 = vpop.f32.mrf.mxu3  ;;  %v947_v48 = vadd.f32 %v904_v39, %v867_v44 }
 0x146   : > { %v949_v46 = vadd.f32 %v944_v43, %v869_v41 }
 0x14a   : > { %v1024_v49 = vpop.f32.mrf.mxu2 }
 0x14b   : > { %v1029_v51 = vadd.f32 %v1024_v49, %v949_v46  ;;  %v984_v52 = vpop.f32.mrf.mxu0  ;;  %v1004_v53 = vpop.f32.mrf.mxu1  ;;  %v1843_v49 = vld [vmem:[%s2840_s5] sm:$0xff] }
 0x14c   : > { %v1027_v54 = vadd.f32 %v984_v52, %v947_v48  ;;  %v1028_v55 = vadd.f32 %v1004_v53, %v948_v47 }
 0x14d   : > { %v1038_v56 = vadd.f32 %v1034_v50, %v1029_v51 }
 0x14e   : > { %v1036_v57 = vadd.f32 %v1034_v50, %v1027_v54  ;;  %v1037_v58 = vadd.f32 %v1034_v50, %v1028_v55  ;;  %v1138_v50 = vld [vmem:[%s2838_s3] sm:$0xff]  ;;  %v2084_v55 = vld [vmem:[%s2838_s3 + $0x8] sm:$0xff] }
 0x14f   : > { %v2083_v59 = vmul.f32 -1.442695, %v1038_v56 }
 0x150   : > { %v2081_v60 = vmul.f32 -1.442695, %v1036_v57  ;;  %v2082_v61 = vmul.f32 -1.442695, %v1037_v58 }
 0x151   : > { %2270 = vpow2.f32 %v2083_v59 }
 0x152   : > { %2272 = vpow2.f32 %v2081_v60 }
 0x153   : > { %2274 = vpow2.f32 %v2082_v61  ;;  %v2091_v61 = vld [vmem:[%s2838_s3 + $0x10] sm:$0xff] }
 0x157   : > { %v2271_v62 = vpop.eup %2270 }
 0x158   : > { %v2273_v63 = vpop.eup %2272  ;;  %v1050_v3 = vadd.f32 1.0, %v2271_v62 }
 0x159   : > { %v2275_v4 = vpop.eup %2274  ;;  %v1048_v5 = vadd.f32 1.0, %v2273_v63 }
 0x15a   : > { %v1049_v6 = vadd.f32 1.0, %v2275_v4  ;;  %2276 = vrcp.f32 %v1050_v3  ;;  %vm1086_vm9 = vweird.f32 %v1050_v3  ;;  %v1090_v14 = vand.u32 2147483647, %v1050_v3 }
 0x15b   : > { %2278 = vrcp.f32 %v1048_v5  ;;  %v1092_v15 = vand.u32 2147483648, %v1050_v3  ;;  %v1062_v19 = vand.u32 2147483648, %v1048_v5  ;;  %v1060_v22 = vand.u32 2147483647, %v1048_v5 }
 0x15c   : > { %2280 = vrcp.f32 %v1049_v6  ;;  %v1077_v20 = vand.u32 2147483648, %v1049_v6  ;;  %v1075_v25 = vand.u32 2147483647, %v1049_v6  ;;  %vm1091_vm14 = vcmp.eq.f32.partialorder %v1090_v14, 8.507059e+37 }
 0x15d   : > { %v1093_v26 = vor.u32 1.1754944e-38, %v1092_v15  ;;  %vm1056_vm15 = vweird.f32 %v1048_v5  ;;  %vm1071_vm8 = vweird.f32 %v1049_v6  ;;  %v1063_v30 = vor.u32 1.1754944e-38, %v1062_v19 }
 0x15e   : > { %v1078_v32 = vor.u32 1.1754944e-38, %v1077_v20  ;;  %vm1061_vm4 = vcmp.eq.f32.partialorder %v1060_v22, 8.507059e+37  ;;  %vm1076_vm2 = vcmp.eq.f32.partialorder %v1075_v25, 8.507059e+37  ;;  %v2103_v20 = vld [vmem:[%s2838_s3 + $0x28] sm:$0xff] }
 0x160   : > { %v2277_v7 = vpop.eup %2276 }
 0x161   : > { %v2279_v8 = vpop.eup %2278  ;;  %v1082_v9 = vmul.f32 %v2277_v7, %v1050_v3  ;;  %vm1087_vm10 = vweird.f32 %v2277_v7 }
 0x162   : > { %v2281_v10 = vpop.eup %2280  ;;  %v1052_v11 = vmul.f32 %v2279_v8, %v1048_v5  ;;  %vm1057_vm11 = vweird.f32 %v2279_v8  ;;  %vm1088_vm13 = vmor %vm1086_vm9, %vm1087_vm10  ;;  %v2099_v5 = vld [vmem:[%s2838_s3 + $0x20] sm:$0xff]  ;;  %vm2865_vm10 = vcmask 736256  }
 0x163   : > { %v1083_v12 = vsub.f32 1.0, %v1082_v9  ;;  %v1067_v13 = vmul.f32 %v2281_v10, %v1049_v6  ;;  %vm1072_vm12 = vweird.f32 %v2281_v10  ;;  %vm1058_vm7 = vmor %vm1056_vm15, %vm1057_vm11 }
 0x164   : > { %v1053_v16 = vsub.f32 1.0, %v1052_v11  ;;  %vm1073_vm6 = vmor %vm1071_vm8, %vm1072_vm12  ;;  %vm1105_vm8 = vcmask 154624  }
 0x165   : > { %v1084_v17 = vmul.f32 %v2277_v7, %v1083_v12  ;;  %v1068_v18 = vsub.f32 1.0, %v1067_v13  ;;  %vm2867_vm12 = vmmov %vm2865_vm10 }
 0x166   : > { %v1054_v21 = vmul.f32 %v2279_v8, %v1053_v16 }
 0x167   : > { %v1085_v23 = vadd.f32 %v2277_v7, %v1084_v17  ;;  %v1069_v24 = vmul.f32 %v2281_v10, %v1068_v18 }
 0x168   : > { %v1055_v27 = vadd.f32 %v2279_v8, %v1054_v21 }
 0x169   : > { %v1089_v28 = vsel %vm1088_vm13, %v2277_v7, %v1085_v23  ;;  %v1070_v29 = vadd.f32 %v2281_v10, %v1069_v24 }
 0x16a   : > { %v1094_v31 = vsel %vm1091_vm14, %v1093_v26, %v1089_v28  ;;  %v1059_v33 = vsel %vm1058_vm7, %v2279_v8, %v1055_v27  ;;  %v1834_v26 = vld [vmem:[%s2839_s4] sm:$0xff]  ;;  %vm2863_vm7 = vcmask 744448  }
 0x16b   : > { %1103 = vrot.lane.b32.xlu1 %v1094_v31, %s2415_s18  ;;  %v1074_v34 = vsel %vm1073_vm6, %v2281_v10, %v1070_v29  ;;  %v1064_v35 = vsel %vm1061_vm4, %v1063_v30, %v1059_v33  ;;  %v2095_v10 = vld [vmem:[%s2838_s3 + $0x18] sm:$0xff]  ;;  %vm2860_vm4 = vcmask 883712   ;;  %v2107_v30 = vld [vmem:[%s2838_s3 + $0x30] sm:$0xff]  ;;  %vm2866_vm11 = vmmov %vm2863_vm7 }
 0x16c   : > { %v1079_v36 = vsel %vm1076_vm2, %v1078_v32, %v1074_v34  ;;  %1099 = vrot.lane.b32.xlu2 %v1064_v35, %s2415_s18  ;;  %vm1130_vm2 = vcmask 556032   ;;  %vm2861_vm6 = vmmov %vm2860_vm4 }
 0x16d   : > { %1101 = vrot.lane.b32.xlu0 %v1079_v36, %s2415_s18  ;;  %s1886_s18 = sshll.u32 %s2643_s21, 4  ;;  %s1887_s18 = int_to_ptr.vmem [resolvable:$true] %s1886_s18 }
 0x1c6   : > { %v1100_v37 = vpop.permute.xlu2 %1099 }
 0x1c7   : > { %v1111_v38 = vmul.f32 %v1100_v37, %v2516_v0 }
 0x1c9   : > { %1117 = vrot.lane.b32.xlu2 %v1111_v38, %s2409_s25 }
 0x1dd   : > { %v1104_v39 = vpop.permute.xlu1 %1103 }
 0x1df   : > { %v1102_v40 = vpop.permute.xlu0 %1101 }
 0x1e0   : > { %v1106_v41 = vsel %vm1105_vm8, %v1100_v37, %v1102_v40  ;;  %v1107_v42 = vsel %vm1105_vm8, %v1102_v40, %v1104_v39  ;;  %v2115_v40 = vld [vmem:[%s2838_s3 + $0x40] sm:$0xff] }
 0x1e1   : > { %v1112_v43 = vmul.f32 %v1106_v41, %v2520_v2  ;;  %v1113_v44 = vmul.f32 %v1107_v42, %v2518_v1 }
 0x1e3   : > { %1121 = vrot.lane.b32.xlu1 %v1113_v44, %s2409_s25  ;;  %1119 = vrot.lane.b32.xlu0 %v1112_v43, %s2409_s25 }
 0x223   : > { %v1118_v0 = vpop.permute.xlu2 %1117 }
 0x255   : > { %v1122_v45 = vpop.permute.xlu1 %1121  ;;  %v1120_v46 = vpop.permute.xlu0 %1119 }
 0x256   : > { %1131 = vst.msk [vmem:[#allocation2 + $0x10] sm:$0xff] %vm1130_vm2, %v1122_v45  ;;  %v1123_v47 = vsel %vm638_vm5, %v1118_v0, %v1120_v46  ;;  %v1124_v2 = vsel %vm638_vm5, %v1120_v46, %v1122_v45 }
 0x257   : > { %1134 = vst.msk [vmem:[%s2643_s21 + $0x10] sm:$0xff] %vm1130_vm2, %v1122_v45  ;;  %1236 = vmatpush.msrb.mxu2 %v1123_v47  ;;  %v2234_v1 = vpack.i.bf16 %v1124_v2, %v1123_v47  ;;  %v2111_v45 = vld [vmem:[%s2838_s3 + $0x38] sm:$0xff] }
 0x258   : > { %1132 = vst [vmem:[%s2643_s21] sm:$0xff] %v1123_v47  ;;  %2088 = vmatmul.msk.f32.vlgmr.msrb.gmra.mxu2 %vm343_vm0, %v1138_v50 }
 0x259   : > { %2235 = vrot.lane.b32.xlu1 %v2234_v1, %s2407_s23  ;;  %2230 = vrot.lane.b32.xlu2 %v2234_v1, %s2406_s22  ;;  %1133 = vst [vmem:[%s2643_s21 + $0x8] sm:$0xff] %v1124_v2 }
 0x25d   : > { %v1137_v48 = vld [vmem:[#allocation2 + $0x10] sm:$0xff] }
 0x25e   : > { %1148 = vrot.lane.b32.xlu0 %v1137_v48, %s2406_s22 }
 0x261   : > { %1366 = vrot.lane.b32.xlu1 %v1137_v48, %s2408_s24  ;;  %1287 = vrot.lane.b32.xlu2 %v1137_v48, %s2407_s23  ;;  %s1863_s23 = scalar_lea.sflag [#allocation4], %s300_s19 }
 0x266   : > { %2240 = vrot.lane.b32.xlu0 %v2234_v1, %s2408_s24 }
 0x269   : > { %2250 = vrot.lane.b32.xlu1 %v2234_v1, %s2410_s26  ;;  %2245 = vrot.lane.b32.xlu2 %v2234_v1, %s2409_s25 }
 0x26e   : > { %1445 = vrot.lane.b32.xlu0 %v1137_v48, %s2409_s25 }
 0x271   : > { %1603 = vrot.lane.b32.xlu1 %v1137_v48, %s2411_s12  ;;  %1524 = vrot.lane.b32.xlu2 %v1137_v48, %s2410_s26  ;;  %s2741_s26 = smul.u32 24, %s2482_s9 }
 0x276   : > { %2255 = vrot.lane.b32.xlu0 %v2234_v1, %s2411_s12 }
 0x279   : > { %2265 = vrot.lane.b32.xlu1 %v2234_v1, %s2413_s17  ;;  %2260 = vrot.lane.b32.xlu2 %v2234_v1, %s2412_s13 }
 0x27e   : > { %1682 = vrot.lane.b32.xlu0 %v1137_v48, %s2412_s13 }
 0x281   : > { %1846 = vperm.xlu1 %2228, %v1843_v49   ;;  %1761 = vrot.lane.b32.xlu2 %v1137_v48, %s2413_s17  ;;  %s1884_s17 = scalar_lea.hbm %s2841_s6, %s2741_s26 }
 0x282   : > { %s1888_s22 = sshll.u32 %s1884_s17, 4  ;;  %s1889_s22 = int_to_ptr.hbm [resolvable:$true] %s1888_s22 }
 0x283   : > { %s2296_s24 = sshra.s32 %s1889_s22, 4  ;;  %s2297_s24 = int_to_ptr.hbm [resolvable:$true] %s2296_s24 }
 0x284   : > { %s2298_s25 = scalar_lea.hbm %s2297_s24, 24  ;;  %p2303_p0 = scmp.lt.s32.totalorder %s2297_s24, %s2841_s6 }
 0x285   : > { %p2299_p11 = scmp.ne.s32.totalorder %s2297_s24, %s2298_s25  ;;  %p2304_p1 = scmp.lt.s32.totalorder %s2302_s1, %s2298_s25 }
 0x286   : > { %1837 = vperm.xlu0 %2269, %v1834_v26  }
 0x287   : > { %p2300_p12 = pnand %p2299_p11, %p2501_p5  ;;  %p2305_p2 = por %p2304_p1, %p2303_p0 }
 0x289   : > { %p2301_p13 = pneg %p2300_p12 }
 0x28b   : > { %p2306_p3 = pnand %p2305_p2, %p2301_p13 }
 0x2b3   : > { %v2231_v51 = vpop.permute.xlu2 %2230 }
 0x2b4   : > { %v2233_v52 = vunpack.i.h.bf16 %v2231_v51  ;;  %v2232_v53 = vunpack.i.l.bf16 %v2231_v51 }
 0x2b6   : > { %v1150_v54 = vsel %vm337_vm3, %v2232_v53, %v2233_v52 }
 0x2b7   : > { %1173 = vmatpush.msra.mxu3 %v1150_v54 }
 0x2b8   : > { %2085 = vmatmul.msk.f32.vlgmr.msra.gmra.mxu3 %vm343_vm0, %v2084_v55 }
 0x2b9   : > { %1256 = vmatpush.msrb.mxu3 %v1124_v2 }
 0x2bb   : > { %v1288_v56 = vpop.permute.xlu2 %1287 }
 0x2bc   : > { %1352 = vmatpush.msra.mxu3 %v1288_v56 }
 0x2c0   : > { %2089 = vmatmul.msk.f32.vlgmr.msrb.gmra.mxu3 %vm343_vm0, %v1138_v50 }
 0x2c3   : > { %v2246_v57 = vpop.permute.xlu2 %2245 }
 0x2c4   : > { %v2248_v58 = vunpack.i.h.bf16 %v2246_v57  ;;  %v2247_v59 = vunpack.i.l.bf16 %v2246_v57 }
 0x2c6   : > { %v1447_v60 = vsel %vm638_vm5, %v2247_v59, %v2248_v58 }
 0x2c7   : > { %1470 = vmatpush.msrb.mxu3 %v1447_v60 }
 0x2c8   : > { %2094 = vmatmul.msk.f32.vlgmr.msra.gmra.mxu3 %vm343_vm0, %v2091_v61 }
 0x2cb   : > { %v2236_v62 = vpop.permute.xlu1 %2235  ;;  %v1525_v14 = vpop.permute.xlu2 %1524 }
 0x2cc   : > { %v2238_v63 = vunpack.i.h.bf16 %v2236_v62  ;;  %v2237_v3 = vunpack.i.l.bf16 %v2236_v62 }
 0x2ce   : > { %v1290_v4 = vsel %vm478_vm1, %v2238_v63, %v1288_v56  ;;  %v1289_v8 = vsel %vm478_vm1, %v2237_v3, %v2238_v63 }
 0x2cf   : > { %1332 = vmatpush.msra.mxu2 %v1290_v4 }
 0x2d0   : > { %v1149_v6 = vpop.permute.xlu0 %1148  ;;  %2093 = vmatmul.msk.f32.vlgmr.msra.gmra.mxu2 %vm343_vm0, %v2091_v61  ;;  %2100 = vmatmul.msk.f32.vlgmr.msrb.gmra.mxu3 %vm343_vm0, %v2099_v5 }
 0x2d1   : > { %v1151_v7 = vsel %vm337_vm3, %v2233_v52, %v1149_v6  ;;  %1213 = vmatpush.msrb.mxu1 %v1149_v6  ;;  %vm2858_vm3 = vcmask 900096  }
 0x2d2   : > { %1193 = vmatpush.msrb.mxu0 %v1151_v7  ;;  %2087 = vmatmul.msk.f32.vlgmr.msrb.gmra.mxu1 %vm343_vm0, %v2084_v55  ;;  %vm2859_vm1 = vmmov %vm2858_vm3 }
 0x2d3   : > { %2086 = vmatmul.msk.f32.vlgmr.msrb.gmra.mxu0 %vm343_vm0, %v2084_v55  ;;  %1312 = vmatpush.msra.mxu1 %v1289_v8  ;;  %v1367_v9 = vpop.permute.xlu1 %1366  ;;  %v2261_v27 = vpop.permute.xlu2 %2260 }
 0x2d4   : > { %1276 = vmatpush.msra.mxu0 %v1137_v48  ;;  %1431 = vmatpush.msrb.mxu2 %v1367_v9  ;;  %v2263_v28 = vunpack.i.h.bf16 %v2261_v27  ;;  %v2262_v29 = vunpack.i.l.bf16 %v2261_v27 }
 0x2d6   : > { %v1684_v35 = vsel %vm2863_vm7, %v2262_v29, %v2263_v28 }
 0x2d8   : > { %v2241_v11 = vpop.permute.xlu0 %2240  ;;  %2098 = vmatmul.msk.f32.vlgmr.msrb.gmra.mxu2 %vm343_vm0, %v2095_v10 }
 0x2d9   : > { %v2243_v12 = vunpack.i.h.bf16 %v2241_v11  ;;  %v2242_v13 = vunpack.i.l.bf16 %v2241_v11 }
 0x2da   : > { %2092 = vmatmul.msk.f32.vlgmr.msra.gmra.mxu1 %vm343_vm0, %v2091_v61 }
 0x2db   : > { %v1369_v15 = vsel %vm2858_vm3, %v2243_v12, %v1367_v9  ;;  %2090 = vmatmul.msk.f32.vlgmr.msra.gmra.mxu0 %vm343_vm0, %v1138_v50  ;;  %v1368_v16 = vsel %vm2859_vm1, %v2242_v13, %v2243_v12  ;;  %v2251_v17 = vpop.permute.xlu1 %2250  ;;  %v1762_v44 = vpop.permute.xlu2 %1761 }
 0x2dc   : > { %1391 = vmatpush.msrb.mxu0 %v1368_v16  ;;  %1411 = vmatpush.msrb.mxu1 %v1369_v15  ;;  %v2253_v18 = vunpack.i.h.bf16 %v2251_v17  ;;  %v2252_v19 = vunpack.i.l.bf16 %v2251_v17 }
 0x2de   : > { %v1526_v21 = vsel %vm2860_vm4, %v2252_v19, %v2253_v18  ;;  %v1527_v22 = vsel %vm2861_vm6, %v2253_v18, %v1525_v14 }
 0x2df   : > { %1549 = vmatpush.msra.mxu2 %v1526_v21  ;;  %1569 = vmatpush.msra.mxu3 %v1527_v22 }
 0x2e0   : > { %v1446_v23 = vpop.permute.xlu0 %1445  ;;  %2104 = vmatmul.msk.f32.vlgmr.msra.gmra.mxu2 %vm343_vm0, %v2103_v20  ;;  %2105 = vmatmul.msk.f32.vlgmr.msra.gmra.mxu3 %vm343_vm0, %v2103_v20 }
 0x2e1   : > { %v1448_v24 = vsel %vm638_vm5, %v2248_v58, %v1446_v23  ;;  %1510 = vmatpush.msra.mxu1 %v1446_v23  ;;  %vm2862_vm5 = vcmask 752640  }
 0x2e2   : > { %2097 = vmatmul.msk.f32.vlgmr.msrb.gmra.mxu1 %vm343_vm0, %v2095_v10  ;;  %1490 = vmatpush.msra.mxu0 %v1448_v24  ;;  %vm2864_vm9 = vmmov %vm2862_vm5 }
 0x2e3   : > { %2096 = vmatmul.msk.f32.vlgmr.msrb.gmra.mxu0 %vm343_vm0, %v2095_v10  ;;  %v1604_v25 = vpop.permute.xlu1 %1603 }
 0x2e4   : > { %1589 = vmatpush.msrb.mxu0 %v1525_v14  ;;  %1668 = vmatpush.msrb.mxu3 %v1604_v25 }
 0x2e8   : > { %v2256_v31 = vpop.permute.xlu0 %2255  ;;  %2110 = vmatmul.msk.f32.vlgmr.msrb.gmra.mxu3 %vm343_vm0, %v2107_v30 }
 0x2e9   : > { %v2258_v32 = vunpack.i.h.bf16 %v2256_v31  ;;  %v2257_v33 = vunpack.i.l.bf16 %v2256_v31 }
 0x2ea   : > { %2102 = vmatmul.msk.f32.vlgmr.msra.gmra.mxu1 %vm343_vm0, %v2099_v5 }
 0x2eb   : > { %v1606_v34 = vsel %vm2862_vm5, %v2258_v32, %v1604_v25  ;;  %2101 = vmatmul.msk.f32.vlgmr.msra.gmra.mxu0 %vm343_vm0, %v2099_v5  ;;  %v1605_v36 = vsel %vm2864_vm9, %v2257_v33, %v2258_v32  ;;  %v2266_v37 = vpop.permute.xlu1 %2265 }
 0x2ec   : > { %1707 = vmatpush.msra.mxu0 %v1684_v35  ;;  %1628 = vmatpush.msrb.mxu1 %v1605_v36  ;;  %v2268_v38 = vunpack.i.h.bf16 %v2266_v37  ;;  %v2267_v39 = vunpack.i.l.bf16 %v2266_v37 }
 0x2ed   : > { %1648 = vmatpush.msrb.mxu2 %v1606_v34 }
 0x2ee   : > { %2109 = vmatmul.msk.f32.vlgmr.msrb.gmra.mxu2 %vm343_vm0, %v2107_v30  ;;  %v1763_v41 = vsel %vm2865_vm10, %v2267_v39, %v2268_v38  ;;  %v1764_v0 = vsel %vm2867_vm12, %v2268_v38, %v1762_v44 }
 0x2ef   : > { %1786 = vmatpush.msra.mxu3 %v1763_v41 }
 0x2f0   : > { %v1683_v42 = vpop.permute.xlu0 %1682  ;;  %2116 = vmatmul.msk.f32.vlgmr.msra.gmra.mxu3 %vm343_vm0, %v2115_v40 }
 0x2f1   : > { %v1685_v43 = vsel %vm2866_vm11, %v2263_v28, %v1683_v42  ;;  %1747 = vmatpush.msra.mxu2 %v1683_v42 }
 0x2f2   : > { %2108 = vmatmul.msk.f32.vlgmr.msrb.gmra.mxu1 %vm343_vm0, %v2107_v30 }
 0x2f3   : > { %1727 = vmatpush.msra.mxu1 %v1685_v43  ;;  %2106 = vmatmul.msk.f32.vlgmr.msrb.gmra.mxu0 %vm343_vm0, %v2103_v20 }
 0x2f4   : > { %1806 = vmatpush.msrb.mxu0 %v1764_v0 }
 0x2f5   : > { %1826 = vmatpush.msrb.mxu1 %v1762_v44 }
 0x2f6   : > { %2114 = vmatmul.msk.f32.vlgmr.msra.gmra.mxu2 %vm343_vm0, %v2111_v45 }
 0x2fa   : > { %2113 = vmatmul.msk.f32.vlgmr.msra.gmra.mxu1 %vm343_vm0, %v2111_v45 }
 0x2fb   : > { %2112 = vmatmul.msk.f32.vlgmr.msra.gmra.mxu0 %vm343_vm0, %v2111_v45 }
 0x302   : > { %2118 = vmatmul.msk.f32.vlgmr.msrb.gmra.mxu1 %vm343_vm0, %v2115_v40 }
 0x303   : > { %2117 = vmatmul.msk.f32.vlgmr.msrb.gmra.mxu0 %vm343_vm0, %v2115_v40 }
 0x304   : > { %2309 = shalt.err (!%p2306_p3)
}
 0x305   : > { %2129 = dma.vmem_to_hbm [thread:$0]  (%p2501_p5), %s1887_s18, 384, %s1889_s22, %s1863_s23   ;;  %v1238_v2 = vpop.f32.mrf.mxu2  ;;  %v1838_v23 = vpop.permute.xlu0 %1837  ;;  %vm1854_vm0 = vcmask 244736  }
 0x306   : > { %v1847_v30 = vpop.permute.xlu1 %1846  ;;  %s1899_s2 = scalar_lea.hbm %s2842_s7, %s2741_s26  ;;  %s1867_s10 = sand.u32 1, %s2482_s9  }
 0x307   : > { %s309_s19 = scalar_lea.vmem [#allocation5], %s2638_s20  ;;  %s1914_s17 = scalar_lea.hbm %s2843_s8, %s2741_s26 }
 0x308   : > { %s1901_s18 = sshll.u32 %s309_s19, 4  ;;  %s2770_s22 = sshll.u32 %s1899_s2, 4  ;;  %s1902_s18 = int_to_ptr.vmem [resolvable:$true] %s1901_s18  ;;  %s1904_s22 = int_to_ptr.hbm [resolvable:$true] %s2770_s22 }
 0x309   : > { %s2773_s23 = scalar_lea.vmem [#allocation7], %s2638_s20  ;;  %s2777_s24 = sshll.u32 %s1914_s17, 4  ;;  %s1919_s24 = int_to_ptr.hbm [resolvable:$true] %s2777_s24 }
 0x30a   : > { %s1916_s9 = sshll.u32 %s2773_s23, 4  ;;  %s2784_s20 = scalar_lea.sflag [#allocation6], %s1867_s10  ;;  %s2781_s9 = int_to_ptr.vmem [resolvable:$true] %s1916_s9 }
 0x30b   : > { %s2324_s26 = sshra.s32 %s1904_s22, 4  ;;  %s2330_s1 = scalar_lea.hbm %s2842_s7, 48  ;;  %s2325_s26 = int_to_ptr.hbm [resolvable:$true] %s2324_s26 }
 0x30c   : > { %s2326_s25 = scalar_lea.hbm %s2325_s26, 24  ;;  %p2331_p9 = scmp.lt.s32.totalorder %s2325_s26, %s2842_s7 }
 0x30d   : > { %p2327_p4 = scmp.ne.s32.totalorder %s2325_s26, %s2326_s25  ;;  %p2332_p10 = scmp.lt.s32.totalorder %s2330_s1, %s2326_s25 }
 0x30f   : > { %p2328_p7 = pnand %p2327_p4, %p2501_p5  ;;  %p2333_p11 = por %p2332_p10, %p2331_p9 }
 0x311   : > { %p2329_p8 = pneg %p2328_p7 }
 0x313   : > { %p2334_p12 = pnand %p2333_p11, %p2329_p8 }
 0x33b   : > { %v1175_v46 = vpop.f32.mrf.mxu3 }
 0x33c   : > { %v1239_v60 = vadd.f32 %v1238_v2, %v1175_v46 }
 0x343   : > { %v1258_v47 = vpop.f32.mrf.mxu3 }
 0x34b   : > { %v1354_v49 = vpop.f32.mrf.mxu3 }
 0x34f   : > { %v1215_v1 = vpop.f32.mrf.mxu1 }
 0x350   : > { %v1195_v48 = vpop.f32.mrf.mxu0 }
 0x351   : > { %v1259_v5 = vadd.f32 %v1258_v47, %v1195_v48 }
 0x353   : > { %v1334_v50 = vpop.f32.mrf.mxu2  ;;  %v1472_v53 = vpop.f32.mrf.mxu3 }
 0x354   : > { %v1358_v11 = vadd.f32 %v1334_v50, %v1259_v5 }
 0x357   : > { %v1314_v51 = vpop.f32.mrf.mxu1 }
 0x358   : > { %v1278_v52 = vpop.f32.mrf.mxu0  ;;  %v1357_v62 = vadd.f32 %v1314_v51, %v1239_v60 }
 0x359   : > { %v1279_v63 = vadd.f32 %v1278_v52, %v1215_v1 }
 0x35b   : > { %v1433_v55 = vpop.f32.mrf.mxu2  ;;  %v1359_v7 = vadd.f32 %v1354_v49, %v1279_v63 }
 0x35d   : > { %v1438_v12 = vadd.f32 %v1433_v55, %v1359_v7 }
 0x35f   : > { %v1413_v54 = vpop.f32.mrf.mxu1 }
 0x360   : > { %v1393_v56 = vpop.f32.mrf.mxu0  ;;  %v1437_v13 = vadd.f32 %v1413_v54, %v1358_v11 }
 0x361   : > { %v1436_v3 = vadd.f32 %v1393_v56, %v1357_v62 }
 0x363   : > { %v1571_v57 = vpop.f32.mrf.mxu3  ;;  %v1551_v61 = vpop.f32.mrf.mxu2  ;;  %v1515_v9 = vadd.f32 %v1472_v53, %v1436_v3 }
 0x365   : > { %v1594_v14 = vadd.f32 %v1551_v61, %v1515_v9 }
 0x367   : > { %v1512_v58 = vpop.f32.mrf.mxu1 }
 0x368   : > { %v1492_v59 = vpop.f32.mrf.mxu0  ;;  %v1517_v15 = vadd.f32 %v1512_v58, %v1438_v12 }
 0x369   : > { %v1516_v16 = vadd.f32 %v1492_v59, %v1437_v13 }
 0x36b   : > { %v1670_v4 = vpop.f32.mrf.mxu3  ;;  %v1595_v24 = vadd.f32 %v1571_v57, %v1516_v16 }
 0x36f   : > { %v1630_v6 = vpop.f32.mrf.mxu1 }
 0x370   : > { %v1591_v8 = vpop.f32.mrf.mxu0  ;;  %v1673_v17 = vadd.f32 %v1630_v6, %v1594_v14 }
 0x371   : > { %v1650_v10 = vpop.f32.mrf.mxu2  ;;  %v1596_v19 = vadd.f32 %v1591_v8, %v1517_v15 }
 0x372   : > { %v1674_v28 = vadd.f32 %v1650_v10, %v1595_v24 }
 0x373   : > { %v1788_v21 = vpop.f32.mrf.mxu3  ;;  %v1675_v27 = vadd.f32 %v1670_v4, %v1596_v19 }
 0x377   : > { %v1729_v18 = vpop.f32.mrf.mxu1 }
 0x378   : > { %v1709_v20 = vpop.f32.mrf.mxu0  ;;  %v1753_v32 = vadd.f32 %v1729_v18, %v1674_v28 }
 0x379   : > { %v1752_v22 = vadd.f32 %v1709_v20, %v1673_v17  ;;  %v1749_v25 = vpop.f32.mrf.mxu2 }
 0x37a   : > { %v1754_v31 = vadd.f32 %v1749_v25, %v1675_v27 }
 0x37b   : > { %v1831_v26 = vadd.f32 %v1788_v21, %v1752_v22 }
 0x37d   : > { %v1840_v29 = vmul.f32 %v1838_v23, %v1831_v26 }
 0x37f   : > { %v1849_v33 = vadd.f32 %v1847_v30, %v1840_v29  ;;  %v1828_v34 = vpop.f32.mrf.mxu1 }
 0x380   : > { %v1833_v35 = vadd.f32 %v1828_v34, %v1754_v31  ;;  %v1808_v36 = vpop.f32.mrf.mxu0 }
 0x381   : > { %1852 = vst [vmem:[%s309_s19] sm:$0xff] %v1849_v33  ;;  %v1856_v37 = vmax.f32 %v1849_v33, 0.0  ;;  %v1832_v38 = vadd.f32 %v1808_v36, %v1753_v32 }
 0x382   : > { %v1842_v39 = vmul.f32 %v1838_v23, %v1833_v35 }
 0x383   : > { %1859 = vst [vmem:[%s2773_s23] sm:$0xff] %v1856_v37  ;;  %v1841_v40 = vmul.f32 %v1838_v23, %v1832_v38 }
 0x384   : > { %v1851_v41 = vadd.f32 %v1847_v30, %v1842_v39 }
 0x385   : > { %v1850_v42 = vadd.f32 %v1847_v30, %v1841_v40 }
 0x386   : > { %v1858_v43 = vmax.f32 %v1851_v41, 0.0  ;;  %1855 = vst.msk [vmem:[%s309_s19 + $0x10] sm:$0xff] %vm1854_vm0, %v1851_v41 }
 0x387   : > { %1853 = vst [vmem:[%s309_s19 + $0x8] sm:$0xff] %v1850_v42  ;;  %v1857_v44 = vmax.f32 %v1850_v42, 0.0 }
 0x388   : > { %2337 = shalt.err (!%p2334_p12)
}
 0x389   : > { %2130 = dma.vmem_to_hbm [thread:$0]  (%p2501_p5), %s1902_s18, 384, %s1904_s22, %s2784_s20   ;;  %1861 = vst.msk [vmem:[%s2773_s23 + $0x10] sm:$0xff] %vm1854_vm0, %v1858_v43 }
 0x38a   : > { %1860 = vst [vmem:[%s2773_s23 + $0x8] sm:$0xff] %v1857_v44  ;;  %s2352_s10 = sshra.s32 %s1919_s24, 4  ;;  %s2358_s26 = scalar_lea.hbm %s2843_s8, 48  ;;  %s2353_s10 = int_to_ptr.hbm [resolvable:$true] %s2352_s10 }
 0x38b   : > { %s2354_s19 = scalar_lea.hbm %s2353_s10, 24  ;;  %p2359_p2 = scmp.lt.s32.totalorder %s2353_s10, %s2843_s8 }
 0x38c   : > { %p2355_p13 = scmp.ne.s32.totalorder %s2353_s10, %s2354_s19  ;;  %p2360_p3 = scmp.lt.s32.totalorder %s2358_s26, %s2354_s19 }
 0x38e   : > { %p2356_p0 = pnand %p2355_p13, %p2501_p5  ;;  %p2361_p4 = por %p2360_p3, %p2359_p2 }
 0x390   : > { %p2357_p1 = pneg %p2356_p0 }
 0x392   : > { %p2362_p7 = pnand %p2361_p4, %p2357_p1 }
 0x394   : > { %2365 = shalt.err (!%p2362_p7)
}
 0x395   : > { %2131 = dma.vmem_to_hbm [thread:$0]  (%p2501_p5), %s2781_s9, 384, %s1919_s24, %s2784_s20  }
 0x396 PF: > { %p2145_p8 = scmp.ge.s32.totalorder %s2404_s30, 2  ;;  %s1930_s18 = sand.u32 1, %s2392_s27  }
 0x397   : > { %s1931_s22 = scalar_lea.sflag [#allocation4], %s1930_s18 }
 0x398   : > { %p2136_p9 = pnand %p2145_p8, %p2505_p6 }
 0x39a   : > { %p2137_p10 = pneg %p2136_p9 }
 0x39c   : > { %2383 = dma.done.wait (%p2137_p10), %s1931_s22, 384  }
 0x39d   : > { %2385 = vsyncadd (%p2137_p10), %s1931_s22, 4294966912  ;;  %s2868_s23 = sadd.s32 4294967294, %s2404_s30  }
 0x39e   : > { %s1940_s15 = sand.u32 1, %s2868_s23  }
 0x39f   : > { %s1941_s0 = scalar_lea.sflag [#allocation6], %s1940_s15 }
 0x3a0   : > { %2387 = dma.done.wait (%p2137_p10), %s1941_s0, 768  }
 0x3a1   : > { %2389 = vsyncadd (%p2137_p10), %s1941_s0, 4294966528  ;;  %p22_p5 = scmp.ge.s32.totalorder %s2486_s11, 4   ;;  %s2869_s27 = smov %s2396_s28 }
 0x3a2   : > { %s2870_s28 = smov %s2400_s29  ;;  %s2871_s29 = smov %s2499_s14 }
 0x3a3   : > { %s2872_s30 = smov %s2486_s11  ;;  %24 = sbr.rel (!%p22_p5) target bundleno = 9 (0x9), region = 127 }
 0x3a8   :  { %1957 = vsyncpa [#allocation4], 1 }
 0x3a9   :  { %1959 = vsyncpa [#allocation4 + $0x1], 1 }
 0x3aa   :  { %1960 = vsyncpa [#allocation6], 1 }
 0x3ab   :  { %1962 = vsyncpa [#allocation6 + $0x1], 1 }

</bundles_post_ra>
